<compile_context>
chip_gen: v7x
topology: tpu7x:2x2x1
jax: 0.10.0
libtpu: 0.0.40
codegen_flags: <defaults>
</compile_context>

<pallas_src>
import math
import functools

import jax
import jax.numpy as jnp
from jax.experimental import pallas as pl
from jax.experimental.pallas import tpu as pltpu


# ---------------------------------------------------------------------------
# In-kernel helpers (traced into the Pallas body)
# ---------------------------------------------------------------------------
def _layernorm_tf(x, gamma, beta, eps=1e-12):
    """TF-style LayerNorm: epsilon inside the sqrt (matches reference)."""
    u = jnp.mean(x, axis=-1, keepdims=True)
    d = x - u
    s = jnp.mean(d * d, axis=-1, keepdims=True)
    return gamma * (d * jax.lax.rsqrt(s + eps)) + beta


def _gelu_erf(x):
    """HuggingFace gelu: x * 0.5 * (1 + erf(x / sqrt(2)))."""
    return x * 0.5 * (1.0 + jax.lax.erf(x / math.sqrt(2.0)))


# ---------------------------------------------------------------------------
# Pallas kernel: one batch element per grid step
# ---------------------------------------------------------------------------
def transformer_block_kernel(
    n_heads,
    x_ref,
    wq_ref, bq_ref, wk_ref, bk_ref, wv_ref, bv_ref,
    woI_ref, bo_ref,
    g1_ref, be1_ref,
    w1_ref, b1_ref, w2_ref, b2_ref,
    g2_ref, be2_ref,
    o_ref,
):
    x_bf = x_ref[0]                          # (S, D) bf16 (cast in wrapper)
    S, D = x_bf.shape
    H = n_heads
    W = D // H

    # --- Q, K, V projections: full-width GEMMs (best MXU fill), f32 accum.
    # The 1/sqrt(W) attention scale is pre-folded into wq/bq by the wrapper.
    q = jnp.dot(x_bf, wq_ref[...], preferred_element_type=jnp.float32) + bq_ref[...]
    k = jnp.dot(x_bf, wk_ref[...], preferred_element_type=jnp.float32) + bk_ref[...]
    v = jnp.dot(x_bf, wv_ref[...], preferred_element_type=jnp.float32) + bv_ref[...]

    # --- head split: (S, D) -> (H, S, W), static lane slices stacked on a NEW
    # leading axis (cheap leading-dim concat); attention then runs as batched
    # dot_generals over heads -- no unrolled per-head loop, no masked stores.
    def split_heads(t):
        return jnp.stack([t[:, hi * W:(hi + 1) * W] for hi in range(H)], axis=0)

    qh = split_heads(q.astype(jnp.bfloat16))    # (H, S, W) bf16
    kh = split_heads(k.astype(jnp.bfloat16))
    vh = split_heads(v.astype(jnp.bfloat16))

    # --- softmax(q k^T / sqrt(W)) v, batched over heads, stable f32 softmax
    s = jnp.einsum('hqw,hkw->hqk', qh, kh, preferred_element_type=jnp.float32)
    s = s - jnp.max(s, axis=-1, keepdims=True)
    e = jnp.exp(s)
    p = e * pl.reciprocal(jnp.sum(e, axis=-1, keepdims=True), approx=True)
    ctx = jnp.einsum('hqk,hkw->hqw', p.astype(jnp.bfloat16), vh,
                     preferred_element_type=jnp.float32)        # (H, S, W) f32

    # --- residual 1:  h + proj(h) == h @ (I + wo) + bo  (exact fold).
    # (I + wo) arrives head-split as (H, W, D), so the head merge is folded
    # straight into the output projection (lane-dense; no (S, D) scatter).
    part = jnp.einsum('hqw,hwd->hqd', ctx.astype(jnp.bfloat16), woI_ref[...],
                      preferred_element_type=jnp.float32)       # (H, S, D)
    y1 = _layernorm_tf(jnp.sum(part, axis=0) + bo_ref[...],
                       g1_ref[...], be1_ref[...])

    # --- residual 2:  norm2(y1 + fc2(gelu(fc1(y1))))
    f = jnp.dot(y1.astype(jnp.bfloat16), w1_ref[...],
                preferred_element_type=jnp.float32) + b1_ref[...]
    f = _gelu_erf(f)   # erf kept to match reference (tanh-GELU only with sign-off)
    f2 = jnp.dot(f.astype(jnp.bfloat16), w2_ref[...],
                 preferred_element_type=jnp.float32) + b2_ref[...]
    y2 = _layernorm_tf(y1 + f2, g2_ref[...], be2_ref[...])

    o_ref[0] = y2.astype(o_ref.dtype)


# ---------------------------------------------------------------------------
# Wrapper
# ---------------------------------------------------------------------------
def prepare_params(params, n_heads):
    """One-time prep (per weight update, NOT per step): bf16 weight cast,
    1/sqrt(W) fold into wq/bq, residual-identity fold + head split of wo."""
    D = params["wq"].shape[0]
    assert D % n_heads == 0, "hidden dim must be divisible by n_heads"
    W = D // n_heads
    inv_sqrt_w = 1.0 / math.sqrt(W)
    # h + h @ wo == h @ (I + wo): fold the residual into the projection.
    wo_plus_i = params["wo"] + jnp.eye(D, dtype=params["wo"].dtype)
    f32, bf16 = jnp.float32, jnp.bfloat16
    return {
        "wq": (params["wq"] * inv_sqrt_w).astype(bf16),
        "bq": (params["bq"] * inv_sqrt_w).astype(f32),
        "wk": params["wk"].astype(bf16), "bk": params["bk"].astype(f32),
        "wv": params["wv"].astype(bf16), "bv": params["bv"].astype(f32),
        "woIh": wo_plus_i.reshape(n_heads, W, D).astype(bf16),
        "bo": params["bo"].astype(f32),
        "g1": params["g1"].astype(f32), "be1": params["be1"].astype(f32),
        "w1": params["w1"].astype(bf16), "b1": params["b1"].astype(f32),
        "w2": params["w2"].astype(bf16), "b2": params["b2"].astype(f32),
        "g2": params["g2"].astype(f32), "be2": params["be2"].astype(f32),
    }


def _vmem_limit_bytes(S, D, FF, H):
    """VMEM budget: generous estimate, capped at 7/8 of the chip's physical
    VMEM (112 MiB on v5e/v6e, 56 MiB on v7x) to leave Mosaic headroom."""
    bf, f32 = 2, 4
    W = D // H
    weights = bf * (4 * D * D + 2 * D * FF)
    small = f32 * (7 * D + FF)
    io = 2 * (bf + f32) * S * D                                  # x + out blocks
    live = (f32 * (6 * S * D + 2 * H * S * S + H * S * D + 2 * S * FF)
            + bf * 3 * H * S * W)
    est = int(1.3 * (weights + small + io + live)) + (2 << 20)
    cap = 64 * 1024 * 1024
    try:
        cap = int(pltpu.get_tpu_info().vmem_capacity_bytes) * 7 // 8
    except Exception:
        pass
    return max(16 * 1024 * 1024, min(est, cap))


def transformer_block(x, prep, n_heads):
    B, S, D = x.shape
    FF = prep["w1"].shape[1]
    H = n_heads
    W = D // H

    x_bf = x.astype(jnp.bfloat16)     # halve x DMA / VMEM block; output stays f32

    def const_spec(shape):
        # Constant index_map across the batch grid -> single buffer is enough.
        zeros = (0,) * len(shape)
        return pl.BlockSpec(shape, lambda b, z=zeros: z, pipeline_mode=pl.Buffered(1))

    in_specs = [
        pl.BlockSpec((1, S, D), lambda b: (b, 0, 0)),    # x: one batch element
        const_spec((D, D)), const_spec((1, D)),          # wq (scale folded), bq
        const_spec((D, D)), const_spec((1, D)),          # wk, bk
        const_spec((D, D)), const_spec((1, D)),          # wv, bv
        const_spec((H, W, D)), const_spec((1, D)),       # (I + wo) head-split, bo
        const_spec((1, D)), const_spec((1, D)),          # gamma1, beta1
        const_spec((D, FF)), const_spec((1, FF)),        # w1, b1
        const_spec((FF, D)), const_spec((1, D)),         # w2, b2
        const_spec((1, D)), const_spec((1, D)),          # gamma2, beta2
    ]

    flops = int(2 * B * S * D * (4 * D + 2 * FF) + 4 * B * S * S * D)
    transcendentals = int(B * H * S * S + B * S * FF + 4 * B * S)
    bytes_accessed = int(2 * (4 * D * D + 2 * D * FF)    # bf16 weights
                         + 4 * (7 * D + FF)              # f32 biases / LN params
                         + 2 * B * S * D                 # x in (bf16)
                         + 4 * B * S * D)                # y out (f32)

    kernel = functools.partial(transformer_block_kernel, n_heads)
    return pl.pallas_call(
        kernel,
        out_shape=jax.ShapeDtypeStruct((B, S, D), jnp.float32),
        grid=(B,),
        in_specs=in_specs,
        out_specs=pl.BlockSpec((1, S, D), lambda b: (b, 0, 0)),
        compiler_params=pltpu.CompilerParams(
            dimension_semantics=("parallel",),
            vmem_limit_bytes=_vmem_limit_bytes(S, D, FF, H),
        ),
        cost_estimate=pl.CostEstimate(
            flops=flops,
            transcendentals=transcendentals,
            bytes_accessed=bytes_accessed,
        ),
    )(
        x_bf,
        prep["wq"], prep["bq"], prep["wk"], prep["bk"],
        prep["wv"], prep["bv"], prep["woIh"], prep["bo"],
        prep["g1"], prep["be1"],
        prep["w1"], prep["b1"], prep["w2"], prep["b2"],
        prep["g2"], prep["be2"],
    )


# ---------------------------------------------------------------------------
# Pure-JAX f32 reference (unfolded, matches the PyTorch module exactly)
# ---------------------------------------------------------------------------
def reference_block(x, p, n_heads):
    B, S, D = x.shape
    W = D // n_heads
    q = x @ p["wq"] + p["bq"]
    k = x @ p["wk"] + p["bk"]
    v = x @ p["wv"] + p["bv"]

    def split_heads(t):  # (B,S,D) -> (B,H,S,W)
        return t.reshape(B, S, n_heads, W).transpose(0, 2, 1, 3)

    qh, kh, vh = split_heads(q), split_heads(k), split_heads(v)
    scores = jnp.einsum("bhqw,bhkw->bhqk", qh, kh) / math.sqrt(W)
    probs = jax.nn.softmax(scores, axis=-1)
    ctx = jnp.einsum("bhqk,bhkw->bhqw", probs, vh)
    h = ctx.transpose(0, 2, 1, 3).reshape(B, S, D)

    def ln(t, g, b, eps=1e-12):
        u = jnp.mean(t, -1, keepdims=True)
        s = jnp.mean((t - u) ** 2, -1, keepdims=True)
        return g * ((t - u) / jnp.sqrt(s + eps)) + b

    y1 = ln(h + (h @ p["wo"] + p["bo"]), p["g1"], p["be1"])
    f = _gelu_erf(y1 @ p["w1"] + p["b1"])
    y2 = ln(y1 + (f @ p["w2"] + p["b2"]), p["g2"], p["be2"])
    return y2


# ---------------------------------------------------------------------------
if __name__ == "__main__":
    B, S, D, H, FF = 2, 8, 32, 4, 64
    key = jax.random.PRNGKey(0)
    ks = jax.random.split(key, 20)

    def nrm(k, shape, scale):
        return (scale * jax.random.normal(k, shape)).astype(jnp.float32)

    params = {
        "wq": nrm(ks[0], (D, D), 0.05), "bq": nrm(ks[1], (1, D), 0.02),
        "wk": nrm(ks[2], (D, D), 0.05), "bk": nrm(ks[3], (1, D), 0.02),
        "wv": nrm(ks[4], (D, D), 0.05), "bv": nrm(ks[5], (1, D), 0.02),
        "wo": nrm(ks[6], (D, D), 0.05), "bo": nrm(ks[7], (1, D), 0.02),
        "g1": (1.0 + 0.1 * jax.random.normal(ks[8], (1, D))).astype(jnp.float32),
        "be1": nrm(ks[9], (1, D), 0.05),
        "w1": nrm(ks[10], (D, FF), 0.05), "b1": nrm(ks[11], (1, FF), 0.02),
        "w2": nrm(ks[12], (FF, D), 0.05), "b2": nrm(ks[13], (1, D), 0.02),
        "g2": (1.0 + 0.1 * jax.random.normal(ks[14], (1, D))).astype(jnp.float32),
        "be2": nrm(ks[15], (1, D), 0.05),
    }
    x = nrm(ks[16], (B, S, D), 1.0)

    prep = prepare_params(params, H)          # one-time bf16 cast / folds
    out = transformer_block(x, prep, n_heads=H)
    out = jax.block_until_ready(out)

    ref = jax.block_until_ready(reference_block(x, params, n_heads=H))
    max_err = float(jnp.max(jnp.abs(out - ref)))
    assert out.shape == (B, S, D) and out.dtype == jnp.float32
    # bf16 MXU operands (incl. folded I+wo / scaled wq) vs. pure-f32 reference.
    assert max_err < 7e-2, f"mismatch vs reference: max abs err {max_err}"

    print("KERNEL_OK")
</pallas_src>

<mosaic_0001>
module attributes {stable_mosaic.version = 11 : i64} {
  func.func @transformer_block_kernel(%arg0: i32, %arg1: memref<1x8x32xbf16, #tpu.memory_space<vmem>>, %arg2: memref<32x32xbf16, #tpu.memory_space<vmem>>, %arg3: memref<1x32xf32, #tpu.memory_space<vmem>>, %arg4: memref<32x32xbf16, #tpu.memory_space<vmem>>, %arg5: memref<1x32xf32, #tpu.memory_space<vmem>>, %arg6: memref<32x32xbf16, #tpu.memory_space<vmem>>, %arg7: memref<1x32xf32, #tpu.memory_space<vmem>>, %arg8: memref<4x8x32xbf16, #tpu.memory_space<vmem>>, %arg9: memref<1x32xf32, #tpu.memory_space<vmem>>, %arg10: memref<1x32xf32, #tpu.memory_space<vmem>>, %arg11: memref<1x32xf32, #tpu.memory_space<vmem>>, %arg12: memref<32x64xbf16, #tpu.memory_space<vmem>>, %arg13: memref<1x64xf32, #tpu.memory_space<vmem>>, %arg14: memref<64x32xbf16, #tpu.memory_space<vmem>>, %arg15: memref<1x32xf32, #tpu.memory_space<vmem>>, %arg16: memref<1x32xf32, #tpu.memory_space<vmem>>, %arg17: memref<1x32xf32, #tpu.memory_space<vmem>>, %arg18: memref<1x8x32xf32, #tpu.memory_space<vmem>>) attributes {dimension_semantics = [#tpu.dimension_semantics<parallel>], iteration_bounds = array<i64: 2>, scalar_prefetch = 0 : i64, scratch_operands = 0 : i64, tpu.core_type = #tpu.core_type<tc>, window_params = [{transform_indices = @transform_0, window_bounds = array<i64: 1, 8, 32>}, {pipeline_mode = #tpu.pipeline_mode<synchronous>, transform_indices = @transform_1, window_bounds = array<i64: 32, 32>}, {pipeline_mode = #tpu.pipeline_mode<synchronous>, transform_indices = @transform_2, window_bounds = array<i64: 1, 32>}, {pipeline_mode = #tpu.pipeline_mode<synchronous>, transform_indices = @transform_3, window_bounds = array<i64: 32, 32>}, {pipeline_mode = #tpu.pipeline_mode<synchronous>, transform_indices = @transform_4, window_bounds = array<i64: 1, 32>}, {pipeline_mode = #tpu.pipeline_mode<synchronous>, transform_indices = @transform_5, window_bounds = array<i64: 32, 32>}, {pipeline_mode = #tpu.pipeline_mode<synchronous>, transform_indices = @transform_6, window_bounds = array<i64: 1, 32>}, {pipeline_mode = #tpu.pipeline_mode<synchronous>, transform_indices = @transform_7, window_bounds = array<i64: 4, 8, 32>}, {pipeline_mode = #tpu.pipeline_mode<synchronous>, transform_indices = @transform_8, window_bounds = array<i64: 1, 32>}, {pipeline_mode = #tpu.pipeline_mode<synchronous>, transform_indices = @transform_9, window_bounds = array<i64: 1, 32>}, {pipeline_mode = #tpu.pipeline_mode<synchronous>, transform_indices = @transform_10, window_bounds = array<i64: 1, 32>}, {pipeline_mode = #tpu.pipeline_mode<synchronous>, transform_indices = @transform_11, window_bounds = array<i64: 32, 64>}, {pipeline_mode = #tpu.pipeline_mode<synchronous>, transform_indices = @transform_12, window_bounds = array<i64: 1, 64>}, {pipeline_mode = #tpu.pipeline_mode<synchronous>, transform_indices = @transform_13, window_bounds = array<i64: 64, 32>}, {pipeline_mode = #tpu.pipeline_mode<synchronous>, transform_indices = @transform_14, window_bounds = array<i64: 1, 32>}, {pipeline_mode = #tpu.pipeline_mode<synchronous>, transform_indices = @transform_15, window_bounds = array<i64: 1, 32>}, {pipeline_mode = #tpu.pipeline_mode<synchronous>, transform_indices = @transform_16, window_bounds = array<i64: 1, 32>}, {transform_indices = @transform_17, window_bounds = array<i64: 1, 8, 32>}]} {
    %c0 = arith.constant 0 : index
    %c0_0 = arith.constant 0 : index
    %c0_1 = arith.constant 0 : index
    %0 = vector.load %arg1[%c0, %c0_0, %c0_1] : memref<1x8x32xbf16, #tpu.memory_space<vmem>>, vector<1x8x32xbf16>
    %1 = vector.shape_cast %0 : vector<1x8x32xbf16> to vector<8x32xbf16>
    %c0_2 = arith.constant 0 : index
    %c0_3 = arith.constant 0 : index
    %2 = vector.load %arg2[%c0_2, %c0_3] : memref<32x32xbf16, #tpu.memory_space<vmem>>, vector<32x32xbf16>
    %cst = arith.constant dense<0.000000e+00> : vector<8x32xf32>
    %3 = tpu.matmul %1, %2, %cst {dimension_numbers = #tpu.dot_dimension_numbers<[1], [0], [0], [1], [0, 0, 1, 1], [], []>} : vector<8x32xbf16>, vector<32x32xbf16>, vector<8x32xf32> -> vector<8x32xf32>
    %c0_4 = arith.constant 0 : index
    %c0_5 = arith.constant 0 : index
    %4 = vector.load %arg3[%c0_4, %c0_5] : memref<1x32xf32, #tpu.memory_space<vmem>>, vector<1x32xf32>
    %5 = vector.broadcast %4 : vector<1x32xf32> to vector<8x32xf32>
    %6 = arith.addf %3, %5 : vector<8x32xf32>
    %c0_6 = arith.constant 0 : index
    %c0_7 = arith.constant 0 : index
    %7 = vector.load %arg4[%c0_6, %c0_7] : memref<32x32xbf16, #tpu.memory_space<vmem>>, vector<32x32xbf16>
    %cst_8 = arith.constant dense<0.000000e+00> : vector<8x32xf32>
    %8 = tpu.matmul %1, %7, %cst_8 {dimension_numbers = #tpu.dot_dimension_numbers<[1], [0], [0], [1], [0, 0, 1, 1], [], []>} : vector<8x32xbf16>, vector<32x32xbf16>, vector<8x32xf32> -> vector<8x32xf32>
    %c0_9 = arith.constant 0 : index
    %c0_10 = arith.constant 0 : index
    %9 = vector.load %arg5[%c0_9, %c0_10] : memref<1x32xf32, #tpu.memory_space<vmem>>, vector<1x32xf32>
    %10 = vector.broadcast %9 : vector<1x32xf32> to vector<8x32xf32>
    %11 = arith.addf %8, %10 : vector<8x32xf32>
    %c0_11 = arith.constant 0 : index
    %c0_12 = arith.constant 0 : index
    %12 = vector.load %arg6[%c0_11, %c0_12] : memref<32x32xbf16, #tpu.memory_space<vmem>>, vector<32x32xbf16>
    %cst_13 = arith.constant dense<0.000000e+00> : vector<8x32xf32>
    %13 = tpu.matmul %1, %12, %cst_13 {dimension_numbers = #tpu.dot_dimension_numbers<[1], [0], [0], [1], [0, 0, 1, 1], [], []>} : vector<8x32xbf16>, vector<32x32xbf16>, vector<8x32xf32> -> vector<8x32xf32>
    %c0_14 = arith.constant 0 : index
    %c0_15 = arith.constant 0 : index
    %14 = vector.load %arg7[%c0_14, %c0_15] : memref<1x32xf32, #tpu.memory_space<vmem>>, vector<1x32xf32>
    %15 = vector.broadcast %14 : vector<1x32xf32> to vector<8x32xf32>
    %16 = arith.addf %13, %15 : vector<8x32xf32>
    %17 = arith.truncf %6 : vector<8x32xf32> to vector<8x32xbf16>
    %18 = vector.extract_strided_slice %17 {offsets = [0, 0], sizes = [8, 8], strides = [1, 1]} : vector<8x32xbf16> to vector<8x8xbf16>
    %19 = vector.extract_strided_slice %17 {offsets = [0, 8], sizes = [8, 8], strides = [1, 1]} : vector<8x32xbf16> to vector<8x8xbf16>
    %20 = vector.extract_strided_slice %17 {offsets = [0, 16], sizes = [8, 8], strides = [1, 1]} : vector<8x32xbf16> to vector<8x8xbf16>
    %21 = vector.extract_strided_slice %17 {offsets = [0, 24], sizes = [8, 8], strides = [1, 1]} : vector<8x32xbf16> to vector<8x8xbf16>
    %22 = vector.shape_cast %18 : vector<8x8xbf16> to vector<1x8x8xbf16>
    %23 = vector.shape_cast %19 : vector<8x8xbf16> to vector<1x8x8xbf16>
    %24 = vector.shape_cast %20 : vector<8x8xbf16> to vector<1x8x8xbf16>
    %25 = vector.shape_cast %21 : vector<8x8xbf16> to vector<1x8x8xbf16>
    %26 = tpu.concatenate %22, %23, %24, %25 in 0 : vector<1x8x8xbf16>, vector<1x8x8xbf16>, vector<1x8x8xbf16>, vector<1x8x8xbf16> -> vector<4x8x8xbf16>
    %27 = arith.truncf %11 : vector<8x32xf32> to vector<8x32xbf16>
    %28 = vector.extract_strided_slice %27 {offsets = [0, 0], sizes = [8, 8], strides = [1, 1]} : vector<8x32xbf16> to vector<8x8xbf16>
    %29 = vector.extract_strided_slice %27 {offsets = [0, 8], sizes = [8, 8], strides = [1, 1]} : vector<8x32xbf16> to vector<8x8xbf16>
    %30 = vector.extract_strided_slice %27 {offsets = [0, 16], sizes = [8, 8], strides = [1, 1]} : vector<8x32xbf16> to vector<8x8xbf16>
    %31 = vector.extract_strided_slice %27 {offsets = [0, 24], sizes = [8, 8], strides = [1, 1]} : vector<8x32xbf16> to vector<8x8xbf16>
    %32 = vector.shape_cast %28 : vector<8x8xbf16> to vector<1x8x8xbf16>
    %33 = vector.shape_cast %29 : vector<8x8xbf16> to vector<1x8x8xbf16>
    %34 = vector.shape_cast %30 : vector<8x8xbf16> to vector<1x8x8xbf16>
    %35 = vector.shape_cast %31 : vector<8x8xbf16> to vector<1x8x8xbf16>
    %36 = tpu.concatenate %32, %33, %34, %35 in 0 : vector<1x8x8xbf16>, vector<1x8x8xbf16>, vector<1x8x8xbf16>, vector<1x8x8xbf16> -> vector<4x8x8xbf16>
    %37 = arith.truncf %16 : vector<8x32xf32> to vector<8x32xbf16>
    %38 = vector.extract_strided_slice %37 {offsets = [0, 0], sizes = [8, 8], strides = [1, 1]} : vector<8x32xbf16> to vector<8x8xbf16>
    %39 = vector.extract_strided_slice %37 {offsets = [0, 8], sizes = [8, 8], strides = [1, 1]} : vector<8x32xbf16> to vector<8x8xbf16>
    %40 = vector.extract_strided_slice %37 {offsets = [0, 16], sizes = [8, 8], strides = [1, 1]} : vector<8x32xbf16> to vector<8x8xbf16>
    %41 = vector.extract_strided_slice %37 {offsets = [0, 24], sizes = [8, 8], strides = [1, 1]} : vector<8x32xbf16> to vector<8x8xbf16>
    %42 = vector.shape_cast %38 : vector<8x8xbf16> to vector<1x8x8xbf16>
    %43 = vector.shape_cast %39 : vector<8x8xbf16> to vector<1x8x8xbf16>
    %44 = vector.shape_cast %40 : vector<8x8xbf16> to vector<1x8x8xbf16>
    %45 = vector.shape_cast %41 : vector<8x8xbf16> to vector<1x8x8xbf16>
    %46 = tpu.concatenate %42, %43, %44, %45 in 0 : vector<1x8x8xbf16>, vector<1x8x8xbf16>, vector<1x8x8xbf16>, vector<1x8x8xbf16> -> vector<4x8x8xbf16>
    "tpu.trace_start"() <{level = 10 : i32, message = "hqw,hkw->hqk"}> : () -> ()
    %cst_16 = arith.constant dense<0.000000e+00> : vector<4x8x8xf32>
    %47 = tpu.matmul %26, %36, %cst_16 {dimension_numbers = #tpu.dot_dimension_numbers<[2], [2], [1], [1], [0, 0, 0, 1, 1, 1], [0], [0]>} : vector<4x8x8xbf16>, vector<4x8x8xbf16>, vector<4x8x8xf32> -> vector<4x8x8xf32>
    "tpu.trace_stop"() : () -> ()
    %cst_17 = arith.constant dense<0xFF800000> : vector<4x8xf32>
    %48 = vector.multi_reduction <maximumf>, %47, %cst_17 [2] : vector<4x8x8xf32> to vector<4x8xf32>
    %49 = vector.shape_cast %48 : vector<4x8xf32> to vector<4x8x1xf32>
    %50 = vector.broadcast %49 : vector<4x8x1xf32> to vector<4x8x8xf32>
    %51 = arith.subf %47, %50 : vector<4x8x8xf32>
    %52 = math.exp %51 : vector<4x8x8xf32>
    %cst_18 = arith.constant dense<0.000000e+00> : vector<4x8xf32>
    %53 = vector.multi_reduction <add>, %52, %cst_18 [2] : vector<4x8x8xf32> to vector<4x8xf32>
    %54 = vector.shape_cast %53 : vector<4x8xf32> to vector<4x8x1xf32>
    %55 = tpu.reciprocal %54 {approx = true} : vector<4x8x1xf32> -> vector<4x8x1xf32>
    %56 = vector.broadcast %55 : vector<4x8x1xf32> to vector<4x8x8xf32>
    %57 = arith.mulf %52, %56 : vector<4x8x8xf32>
    %58 = arith.truncf %57 : vector<4x8x8xf32> to vector<4x8x8xbf16>
    "tpu.trace_start"() <{level = 10 : i32, message = "hqk,hkw->hqw"}> : () -> ()
    %cst_19 = arith.constant dense<0.000000e+00> : vector<4x8x8xf32>
    %59 = tpu.matmul %58, %46, %cst_19 {dimension_numbers = #tpu.dot_dimension_numbers<[2], [1], [1], [2], [0, 0, 0, 1, 1, 2], [0], [0]>} : vector<4x8x8xbf16>, vector<4x8x8xbf16>, vector<4x8x8xf32> -> vector<4x8x8xf32>
    "tpu.trace_stop"() : () -> ()
    %60 = arith.truncf %59 : vector<4x8x8xf32> to vector<4x8x8xbf16>
    %c0_20 = arith.constant 0 : index
    %c0_21 = arith.constant 0 : index
    %c0_22 = arith.constant 0 : index
    %61 = vector.load %arg8[%c0_20, %c0_21, %c0_22] : memref<4x8x32xbf16, #tpu.memory_space<vmem>>, vector<4x8x32xbf16>
    "tpu.trace_start"() <{level = 10 : i32, message = "hqw,hwd->hqd"}> : () -> ()
    %cst_23 = arith.constant dense<0.000000e+00> : vector<4x8x32xf32>
    %62 = tpu.matmul %60, %61, %cst_23 {dimension_numbers = #tpu.dot_dimension_numbers<[2], [1], [1], [2], [0, 0, 0, 1, 1, 2], [0], [0]>} : vector<4x8x8xbf16>, vector<4x8x32xbf16>, vector<4x8x32xf32> -> vector<4x8x32xf32>
    "tpu.trace_stop"() : () -> ()
    %cst_24 = arith.constant dense<0.000000e+00> : vector<8x32xf32>
    %63 = vector.multi_reduction <add>, %62, %cst_24 [0] : vector<4x8x32xf32> to vector<8x32xf32>
    %c0_25 = arith.constant 0 : index
    %c0_26 = arith.constant 0 : index
    %64 = vector.load %arg9[%c0_25, %c0_26] : memref<1x32xf32, #tpu.memory_space<vmem>>, vector<1x32xf32>
    %65 = vector.broadcast %64 : vector<1x32xf32> to vector<8x32xf32>
    %66 = arith.addf %63, %65 : vector<8x32xf32>
    %c0_27 = arith.constant 0 : index
    %c0_28 = arith.constant 0 : index
    %67 = vector.load %arg10[%c0_27, %c0_28] : memref<1x32xf32, #tpu.memory_space<vmem>>, vector<1x32xf32>
    %c0_29 = arith.constant 0 : index
    %c0_30 = arith.constant 0 : index
    %68 = vector.load %arg11[%c0_29, %c0_30] : memref<1x32xf32, #tpu.memory_space<vmem>>, vector<1x32xf32>
    %cst_31 = arith.constant dense<0.000000e+00> : vector<8xf32>
    %69 = vector.multi_reduction <add>, %66, %cst_31 [1] : vector<8x32xf32> to vector<8xf32>
    %70 = vector.shape_cast %69 : vector<8xf32> to vector<8x1xf32>
    %cst_32 = arith.constant 3.200000e+01 : f32
    %71 = vector.broadcast %cst_32 : f32 to vector<8x1xf32>
    %72 = arith.divf %70, %71 : vector<8x1xf32>
    %73 = vector.broadcast %72 : vector<8x1xf32> to vector<8x32xf32>
    %74 = arith.subf %66, %73 : vector<8x32xf32>
    %75 = arith.mulf %74, %74 : vector<8x32xf32>
    %cst_33 = arith.constant dense<0.000000e+00> : vector<8xf32>
    %76 = vector.multi_reduction <add>, %75, %cst_33 [1] : vector<8x32xf32> to vector<8xf32>
    %77 = vector.shape_cast %76 : vector<8xf32> to vector<8x1xf32>
    %cst_34 = arith.constant 3.200000e+01 : f32
    %78 = vector.broadcast %cst_34 : f32 to vector<8x1xf32>
    %79 = arith.divf %77, %78 : vector<8x1xf32>
    %cst_35 = arith.constant 9.99999996E-13 : f32
    %80 = vector.broadcast %cst_35 : f32 to vector<8x1xf32>
    %81 = arith.addf %79, %80 : vector<8x1xf32>
    %82 = math.rsqrt %81 : vector<8x1xf32>
    %83 = vector.broadcast %82 : vector<8x1xf32> to vector<8x32xf32>
    %84 = arith.mulf %74, %83 : vector<8x32xf32>
    %85 = vector.broadcast %67 : vector<1x32xf32> to vector<8x32xf32>
    %86 = arith.mulf %85, %84 : vector<8x32xf32>
    %87 = vector.broadcast %68 : vector<1x32xf32> to vector<8x32xf32>
    %88 = arith.addf %86, %87 : vector<8x32xf32>
    %89 = arith.truncf %88 : vector<8x32xf32> to vector<8x32xbf16>
    %c0_36 = arith.constant 0 : index
    %c0_37 = arith.constant 0 : index
    %90 = vector.load %arg12[%c0_36, %c0_37] : memref<32x64xbf16, #tpu.memory_space<vmem>>, vector<32x64xbf16>
    %cst_38 = arith.constant dense<0.000000e+00> : vector<8x64xf32>
    %91 = tpu.matmul %89, %90, %cst_38 {dimension_numbers = #tpu.dot_dimension_numbers<[1], [0], [0], [1], [0, 0, 1, 1], [], []>} : vector<8x32xbf16>, vector<32x64xbf16>, vector<8x64xf32> -> vector<8x64xf32>
    %c0_39 = arith.constant 0 : index
    %c0_40 = arith.constant 0 : index
    %92 = vector.load %arg13[%c0_39, %c0_40] : memref<1x64xf32, #tpu.memory_space<vmem>>, vector<1x64xf32>
    %93 = vector.broadcast %92 : vector<1x64xf32> to vector<8x64xf32>
    %94 = arith.addf %91, %93 : vector<8x64xf32>
    %cst_41 = arith.constant 5.000000e-01 : f32
    %95 = vector.broadcast %cst_41 : f32 to vector<8x64xf32>
    %96 = arith.mulf %94, %95 : vector<8x64xf32>
    %cst_42 = arith.constant 1.41421354 : f32
    %97 = vector.broadcast %cst_42 : f32 to vector<8x64xf32>
    %98 = arith.divf %94, %97 : vector<8x64xf32>
    %99 = math.erf %98 : vector<8x64xf32>
    %cst_43 = arith.constant 1.000000e+00 : f32
    %100 = vector.broadcast %cst_43 : f32 to vector<8x64xf32>
    %101 = arith.addf %100, %99 : vector<8x64xf32>
    %102 = arith.mulf %96, %101 : vector<8x64xf32>
    %103 = arith.truncf %102 : vector<8x64xf32> to vector<8x64xbf16>
    %c0_44 = arith.constant 0 : index
    %c0_45 = arith.constant 0 : index
    %104 = vector.load %arg14[%c0_44, %c0_45] : memref<64x32xbf16, #tpu.memory_space<vmem>>, vector<64x32xbf16>
    %cst_46 = arith.constant dense<0.000000e+00> : vector<8x32xf32>
    %105 = tpu.matmul %103, %104, %cst_46 {dimension_numbers = #tpu.dot_dimension_numbers<[1], [0], [0], [1], [0, 0, 1, 1], [], []>} : vector<8x64xbf16>, vector<64x32xbf16>, vector<8x32xf32> -> vector<8x32xf32>
    %c0_47 = arith.constant 0 : index
    %c0_48 = arith.constant 0 : index
    %106 = vector.load %arg15[%c0_47, %c0_48] : memref<1x32xf32, #tpu.memory_space<vmem>>, vector<1x32xf32>
    %107 = vector.broadcast %106 : vector<1x32xf32> to vector<8x32xf32>
    %108 = arith.addf %105, %107 : vector<8x32xf32>
    %109 = arith.addf %88, %108 : vector<8x32xf32>
    %c0_49 = arith.constant 0 : index
    %c0_50 = arith.constant 0 : index
    %110 = vector.load %arg16[%c0_49, %c0_50] : memref<1x32xf32, #tpu.memory_space<vmem>>, vector<1x32xf32>
    %c0_51 = arith.constant 0 : index
    %c0_52 = arith.constant 0 : index
    %111 = vector.load %arg17[%c0_51, %c0_52] : memref<1x32xf32, #tpu.memory_space<vmem>>, vector<1x32xf32>
    %cst_53 = arith.constant dense<0.000000e+00> : vector<8xf32>
    %112 = vector.multi_reduction <add>, %109, %cst_53 [1] : vector<8x32xf32> to vector<8xf32>
    %113 = vector.shape_cast %112 : vector<8xf32> to vector<8x1xf32>
    %cst_54 = arith.constant 3.200000e+01 : f32
    %114 = vector.broadcast %cst_54 : f32 to vector<8x1xf32>
    %115 = arith.divf %113, %114 : vector<8x1xf32>
    %116 = vector.broadcast %115 : vector<8x1xf32> to vector<8x32xf32>
    %117 = arith.subf %109, %116 : vector<8x32xf32>
    %118 = arith.mulf %117, %117 : vector<8x32xf32>
    %cst_55 = arith.constant dense<0.000000e+00> : vector<8xf32>
    %119 = vector.multi_reduction <add>, %118, %cst_55 [1] : vector<8x32xf32> to vector<8xf32>
    %120 = vector.shape_cast %119 : vector<8xf32> to vector<8x1xf32>
    %cst_56 = arith.constant 3.200000e+01 : f32
    %121 = vector.broadcast %cst_56 : f32 to vector<8x1xf32>
    %122 = arith.divf %120, %121 : vector<8x1xf32>
    %cst_57 = arith.constant 9.99999996E-13 : f32
    %123 = vector.broadcast %cst_57 : f32 to vector<8x1xf32>
    %124 = arith.addf %122, %123 : vector<8x1xf32>
    %125 = math.rsqrt %124 : vector<8x1xf32>
    %126 = vector.broadcast %125 : vector<8x1xf32> to vector<8x32xf32>
    %127 = arith.mulf %117, %126 : vector<8x32xf32>
    %128 = vector.broadcast %110 : vector<1x32xf32> to vector<8x32xf32>
    %129 = arith.mulf %128, %127 : vector<8x32xf32>
    %130 = vector.broadcast %111 : vector<1x32xf32> to vector<8x32xf32>
    %131 = arith.addf %129, %130 : vector<8x32xf32>
    %c0_58 = arith.constant 0 : index
    %c0_59 = arith.constant 0 : index
    %c0_60 = arith.constant 0 : index
    %132 = vector.load %arg18[%c0_58, %c0_59, %c0_60] : memref<1x8x32xf32, #tpu.memory_space<vmem>>, vector<1x8x32xf32>
    %133 = vector.shape_cast %132 : vector<1x8x32xf32> to vector<8x32xf32>
    %134 = vector.shape_cast %131 : vector<8x32xf32> to vector<1x8x32xf32>
    tpu.vector_store %arg18[%c0_58, %c0_59, %c0_60], %134 {strides = array<i32>} : memref<1x8x32xf32, #tpu.memory_space<vmem>>, vector<1x8x32xf32>,
    return
  }
  func.func @transform_0(%arg0: i32) -> (i32, i32, i32) {
    %c0_i32 = arith.constant 0 : i32
    %c0_i32_0 = arith.constant 0 : i32
    %c0_i32_1 = arith.constant 0 : i32
    return %arg0, %c0_i32, %c0_i32_0 : i32, i32, i32
  }
  func.func @transform_1(%arg0: i32) -> (i32, i32) {
    %c0_i32 = arith.constant 0 : i32
    %c0_i32_0 = arith.constant 0 : i32
    %c0_i32_1 = arith.constant 0 : i32
    return %c0_i32, %c0_i32_0 : i32, i32
  }
  func.func @transform_2(%arg0: i32) -> (i32, i32) {
    %c0_i32 = arith.constant 0 : i32
    %c0_i32_0 = arith.constant 0 : i32
    %c0_i32_1 = arith.constant 0 : i32
    return %c0_i32, %c0_i32_0 : i32, i32
  }
  func.func @transform_3(%arg0: i32) -> (i32, i32) {
    %c0_i32 = arith.constant 0 : i32
    %c0_i32_0 = arith.constant 0 : i32
    %c0_i32_1 = arith.constant 0 : i32
    return %c0_i32, %c0_i32_0 : i32, i32
  }
  func.func @transform_4(%arg0: i32) -> (i32, i32) {
    %c0_i32 = arith.constant 0 : i32
    %c0_i32_0 = arith.constant 0 : i32
    %c0_i32_1 = arith.constant 0 : i32
    return %c0_i32, %c0_i32_0 : i32, i32
  }
  func.func @transform_5(%arg0: i32) -> (i32, i32) {
    %c0_i32 = arith.constant 0 : i32
    %c0_i32_0 = arith.constant 0 : i32
    %c0_i32_1 = arith.constant 0 : i32
    return %c0_i32, %c0_i32_0 : i32, i32
  }
  func.func @transform_6(%arg0: i32) -> (i32, i32) {
    %c0_i32 = arith.constant 0 : i32
    %c0_i32_0 = arith.constant 0 : i32
    %c0_i32_1 = arith.constant 0 : i32
    return %c0_i32, %c0_i32_0 : i32, i32
  }
  func.func @transform_7(%arg0: i32) -> (i32, i32, i32) {
    %c0_i32 = arith.constant 0 : i32
    %c0_i32_0 = arith.constant 0 : i32
    %c0_i32_1 = arith.constant 0 : i32
    %c0_i32_2 = arith.constant 0 : i32
    return %c0_i32, %c0_i32_0, %c0_i32_1 : i32, i32, i32
  }
  func.func @transform_8(%arg0: i32) -> (i32, i32) {
    %c0_i32 = arith.constant 0 : i32
    %c0_i32_0 = arith.constant 0 : i32
    %c0_i32_1 = arith.constant 0 : i32
    return %c0_i32, %c0_i32_0 : i32, i32
  }
  func.func @transform_9(%arg0: i32) -> (i32, i32) {
    %c0_i32 = arith.constant 0 : i32
    %c0_i32_0 = arith.constant 0 : i32
    %c0_i32_1 = arith.constant 0 : i32
    return %c0_i32, %c0_i32_0 : i32, i32
  }
  func.func @transform_10(%arg0: i32) -> (i32, i32) {
    %c0_i32 = arith.constant 0 : i32
    %c0_i32_0 = arith.constant 0 : i32
    %c0_i32_1 = arith.constant 0 : i32
    return %c0_i32, %c0_i32_0 : i32, i32
  }
  func.func @transform_11(%arg0: i32) -> (i32, i32) {
    %c0_i32 = arith.constant 0 : i32
    %c0_i32_0 = arith.constant 0 : i32
    %c0_i32_1 = arith.constant 0 : i32
    return %c0_i32, %c0_i32_0 : i32, i32
  }
  func.func @transform_12(%arg0: i32) -> (i32, i32) {
    %c0_i32 = arith.constant 0 : i32
    %c0_i32_0 = arith.constant 0 : i32
    %c0_i32_1 = arith.constant 0 : i32
    return %c0_i32, %c0_i32_0 : i32, i32
  }
  func.func @transform_13(%arg0: i32) -> (i32, i32) {
    %c0_i32 = arith.constant 0 : i32
    %c0_i32_0 = arith.constant 0 : i32
    %c0_i32_1 = arith.constant 0 : i32
    return %c0_i32, %c0_i32_0 : i32, i32
  }
  func.func @transform_14(%arg0: i32) -> (i32, i32) {
    %c0_i32 = arith.constant 0 : i32
    %c0_i32_0 = arith.constant 0 : i32
    %c0_i32_1 = arith.constant 0 : i32
    return %c0_i32, %c0_i32_0 : i32, i32
  }
  func.func @transform_15(%arg0: i32) -> (i32, i32) {
    %c0_i32 = arith.constant 0 : i32
    %c0_i32_0 = arith.constant 0 : i32
    %c0_i32_1 = arith.constant 0 : i32
    return %c0_i32, %c0_i32_0 : i32, i32
  }
  func.func @transform_16(%arg0: i32) -> (i32, i32) {
    %c0_i32 = arith.constant 0 : i32
    %c0_i32_0 = arith.constant 0 : i32
    %c0_i32_1 = arith.constant 0 : i32
    return %c0_i32, %c0_i32_0 : i32, i32
  }
  func.func @transform_17(%arg0: i32) -> (i32, i32, i32) {
    %c0_i32 = arith.constant 0 : i32
    %c0_i32_0 = arith.constant 0 : i32
    %c0_i32_1 = arith.constant 0 : i32
    return %arg0, %c0_i32, %c0_i32_0 : i32, i32, i32
  }
}

</mosaic_0001>

<bundles_post_ra>
// kernel: tpu_custom_call.1
= control target key start
LH: loop header
LB: loop body
LE: loop exit
PB: predicated region body
PF: predicated region fallthrough
CT: control target
= control target key end

     0   :  { %s2917_s0 = inlined_call_operand.hbm [shape: bf16[2,8,32], index: 0, kind: input, shape index: {}]   ;;  %s2918_s1 = inlined_call_operand.vmem [shape: bf16[32,32], index: 1, kind: input, shape index: {}]   ;;  %s2919_s2 = inlined_call_operand.vmem [shape: f32[1,32], index: 2, kind: input, shape index: {}]   ;;  %s2920_s3 = inlined_call_operand.vmem [shape: bf16[32,32], index: 3, kind: input, shape index: {}]   ;;  %s2921_s4 = inlined_call_operand.vmem [shape: f32[1,32], index: 4, kind: input, shape index: {}]   ;;  %s2922_s5 = inlined_call_operand.vmem [shape: bf16[32,32], index: 5, kind: input, shape index: {}]   ;;  %s2923_s6 = inlined_call_operand.hbm [shape: f32[1,32], index: 6, kind: input, shape index: {}]   ;;  %s2924_s7 = inlined_call_operand.hbm [shape: bf16[4,8,32], index: 7, kind: input, shape index: {}]   ;;  %s2925_s8 = inlined_call_operand.hbm [shape: f32[1,32], index: 8, kind: input, shape index: {}]   ;;  %s2926_s9 = inlined_call_operand.hbm [shape: f32[1,32], index: 9, kind: input, shape index: {}]   ;;  %s2927_s10 = inlined_call_operand.vmem [shape: f32[1,32], index: 10, kind: input, shape index: {}]   ;;  %s2928_s11 = inlined_call_operand.vmem [shape: bf16[32,64], index: 11, kind: input, shape index: {}]   ;;  %s2929_s12 = inlined_call_operand.vmem [shape: f32[1,64], index: 12, kind: input, shape index: {}]   ;;  %s2930_s13 = inlined_call_operand.vmem [shape: bf16[64,32], index: 13, kind: input, shape index: {}]   ;;  %s2931_s14 = inlined_call_operand.vmem [shape: f32[1,32], index: 14, kind: input, shape index: {}]   ;;  %s2932_s15 = inlined_call_operand.vmem [shape: f32[1,32], index: 15, kind: input, shape index: {}]   ;;  %s2933_s16 = inlined_call_operand.vmem [shape: f32[1,32], index: 16, kind: input, shape index: {}]   ;;  %s2934_s17 = inlined_call_operand.hbm [shape: f32[2,8,32], index: 17, kind: output, shape index: {}]  }
   0x1   :  { %2941 = sst [smem:[#allocation16_spill]] %s2917_s0 }
   0x2   :  { %2942 = sst [smem:[#allocation17_spill]] %s2918_s1 }
   0x3   :  { %2943 = sst [smem:[#allocation18_spill]] %s2919_s2 }
   0x4   :  { %2944 = sst [smem:[#allocation19_spill]] %s2920_s3 }
   0x5   :  { %2945 = sst [smem:[#allocation20_spill]] %s2923_s6 }
   0x6   :  { %2946 = sst [smem:[#allocation21_spill]] %s2924_s7 }
   0x7   :  { %2947 = sst [smem:[#allocation22_spill]] %s2925_s8 }
   0x8   :  { %2948 = sst [smem:[#allocation23_spill]] %s2926_s9 }
   0x9   :  { %2949 = sst [smem:[#allocation24_spill]] %s2929_s12 }
   0xa   :  { %2950 = sst [smem:[#allocation25_spill]] %s2931_s14 }
   0xb   :  { %2951 = sst [smem:[#allocation26_spill]] %s2932_s15 }
   0xc   :  { %2952 = sst [smem:[#allocation27_spill]] %s2933_s16 }
   0xd   :  { %2953 = sst [smem:[#allocation28_spill]] %s2934_s17 }
   0xe   :  { %22 = vsyncpa [#allocation3], 0 }
   0xf   :  { %24 = vsyncpa [#allocation3 + $0x1], 0 }
  0x10   :  { %25 = vsyncpa [#allocation6], 0 }
  0x11   :  { %26 = vsyncpa [#allocation9], 0 }
  0x12   :  { %27 = vsyncpa [#allocation4], 0 }
  0x13   :  { %29 = vsyncpa [#allocation4 + $0x1], 0  ;;  %s2465_s24 = smov 0   ;;  %s2467_s25 = smov 0  }
  0x14   :  { %s2469_s26 = smov 0   ;;  %s2471_s27 = smov 0  }
  0x15 LB: > { %s2362_s28 = smov [#allocation5]   ;;  %s2486_s0 = sadd.s32 4294967295, %s2360_s27   ;;  %s2360_s27 = sphi %s2471_s27, %s2987_s27   ;;  %s2356_s26 = sphi %s2469_s26, %s2986_s26   ;;  %s2352_s25 = sphi %s2467_s25, %s2985_s25   ;;  %s2348_s24 = sphi %s2465_s24, %s2984_s24  }
  0x16   : > { %s456_s29 = sshll.u32 %s2362_s28, 4  ;;  %p1801_p0 = scmp.ge.s32.totalorder %s2360_s27, 1  ;;  %s2491_s29 = int_to_ptr.vmem [resolvable:$true] %s456_s29 }
  0x17   : > { %p2938_p1 = scmp.eq.s32.totalorder %s2486_s0, 0  ;;  %p428_p2 = scmp.lt.s32.totalorder %s2360_s27, 3 }
  0x18   : > { %s2363_s18 = smov [#allocation8]   ;;  %s2364_s1 = smov [#allocation7]  }
  0x19   : > { %p2493_p3 = pnand %p1801_p0, %p428_p2  ;;  %s480_s19 = sshll.u32 %s2363_s18, 4  ;;  %s2500_s19 = int_to_ptr.vmem [resolvable:$true] %s480_s19 }
  0x1a   : > { %s466_s20 = sshll.u32 %s2364_s1, 4  ;;  %s2956_s6 = sld [smem:[#allocation20_spill]]  ;;  %s2508_s20 = int_to_ptr.vmem [resolvable:$true] %s466_s20 }
  0x1b   : > { %s2954_s30 = scalar_select %p2493_p3, 1, 0 }
  0x1c   : > { %p2036_p5 = pneg %p2493_p3 }
  0x1e   : > { %p2504_p6 = pnand %p2036_p5, %p2938_p1 }
  0x20   : > { %s2144_s28 = scalar_lea.hbm %s2956_s6, 16  ;;  %p2518_p8 = pneg %p2504_p6 }
  0x21   : > { %p2145_p7 = scmp.ne.s32.totalorder %s2956_s6, %s2144_s28  ;;  %p2151_p11 = scmp.lt.u32.totalorder %s2144_s28, %s2956_s6 }
  0x23   : > { %p2147_p9 = pnand %p2518_p8, %p2145_p7 }
  0x25   : > { %p2148_p10 = pneg %p2147_p9 }
  0x27   : > { %p2153_p12 = pnand %p2151_p11, %p2148_p10 }
  0x29   : > { %2156 = shalt.err (!%p2153_p12)
}
  0x2a   : > { %s2157_s16 = scalar_lea.vmem %s2491_s29, 16  ;;  %s2164_s17 = scalar_lea.vmem %s2491_s29, 32 }
  0x2b   : > { %p2158_p13 = scmp.ne.s32.totalorder %s2491_s29, %s2157_s16  ;;  %p2165_p5 = scmp.lt.s32.totalorder %s2491_s29, %s2491_s29 }
  0x2c   : > { %p2166_p7 = scmp.lt.s32.totalorder %s2164_s17, %s2157_s16 }
  0x2d   : > { %p2160_p0 = pnand %p2158_p13, %p2518_p8 }
  0x2e   : > { %p2167_p9 = por %p2166_p7, %p2165_p5 }
  0x2f   : > { %p2161_p2 = pneg %p2160_p0 }
  0x31   : > { %p2168_p4 = pnand %p2167_p9, %p2161_p2 }
  0x33   : > { %2171 = shalt.err (!%p2168_p4)
}
  0x34   : > { %2039 = dma.hbm_to_vmem [thread:$0]  (!%p2504_p6), %s2956_s6, 16, %s2491_s29, [#allocation6]  }
  0x35   : > { %s2958_s8 = sld [smem:[#allocation22_spill]] }
  0x3b   : > { %s2172_s1 = scalar_lea.hbm %s2958_s8, 16 }
  0x3c   : > { %p2173_p10 = scmp.ne.s32.totalorder %s2958_s8, %s2172_s1  ;;  %p2179_p4 = scmp.lt.u32.totalorder %s2172_s1, %s2958_s8 }
  0x3e   : > { %p2175_p11 = pnand %p2173_p10, %p2518_p8 }
  0x40   : > { %p2176_p12 = pneg %p2175_p11 }
  0x42   : > { %p2181_p13 = pnand %p2179_p4, %p2176_p12 }
  0x44   : > { %2184 = shalt.err (!%p2181_p13)
}
  0x45   : > { %s2185_s29 = scalar_lea.vmem %s2500_s19, 16  ;;  %s2192_s12 = scalar_lea.vmem %s2500_s19, 32 }
  0x46   : > { %p2186_p0 = scmp.ne.s32.totalorder %s2500_s19, %s2185_s29  ;;  %p2193_p7 = scmp.lt.s32.totalorder %s2500_s19, %s2500_s19 }
  0x47   : > { %p2194_p9 = scmp.lt.s32.totalorder %s2192_s12, %s2185_s29 }
  0x48   : > { %p2188_p2 = pnand %p2186_p0, %p2518_p8 }
  0x49   : > { %p2195_p10 = por %p2194_p9, %p2193_p7 }
  0x4a   : > { %p2189_p5 = pneg %p2188_p2 }
  0x4c   : > { %p2196_p11 = pnand %p2195_p10, %p2189_p5 }
  0x4e   : > { %2199 = shalt.err (!%p2196_p11)
}
  0x4f   : > { %2045 = dma.hbm_to_vmem [thread:$0]  (!%p2504_p6), %s2958_s8, 16, %s2500_s19, [#allocation9]  }
  0x50   : > { %s2959_s7 = sld [smem:[#allocation21_spill]] }
  0x56   : > { %s2200_s28 = scalar_lea.hbm %s2959_s7, 256 }
  0x57   : > { %p2201_p12 = scmp.ne.s32.totalorder %s2959_s7, %s2200_s28  ;;  %p2207_p0 = scmp.lt.u32.totalorder %s2200_s28, %s2959_s7 }
  0x59   : > { %p2203_p4 = pnand %p2201_p12, %p2518_p8 }
  0x5b   : > { %p2204_p13 = pneg %p2203_p4 }
  0x5d   : > { %p2209_p2 = pnand %p2207_p0, %p2204_p13 }
  0x5f   : > { %2212 = shalt.err (!%p2209_p2)
}
  0x60   : > { %s2213_s19 = scalar_lea.vmem %s2508_s20, 256  ;;  %p2221_p10 = scmp.lt.s32.totalorder %s2508_s20, %s2508_s20 }
  0x61   : > { %p2214_p5 = scmp.ne.s32.totalorder %s2508_s20, %s2213_s19  ;;  %p2222_p11 = scmp.lt.s32.totalorder %s2213_s19, %s2213_s19 }
  0x63   : > { %p2216_p7 = pnand %p2214_p5, %p2518_p8  ;;  %p2223_p12 = por %p2222_p11, %p2221_p10 }
  0x65   : > { %p2217_p9 = pneg %p2216_p7 }
  0x67   : > { %p2224_p4 = pnand %p2223_p12, %p2217_p9 }
  0x69   : > { %2227 = shalt.err (!%p2224_p4)
}
  0x6a   : > { %s2365_s12 = smov 64   ;;  %s2366_s14 = smov 4  }
  0x6b   : > { %2042 = dma.hbm_to_vmem [thread:$0]  (!%p2504_p6), %s2959_s7, 256, %s2508_s20, [#allocation6], %s2365_s12, %s2365_s12, %s2366_s14  }
  0x6c   : > { %s2367_s23 = smov [#allocation10]   ;;  %s2960_s9 = sld [smem:[#allocation23_spill]] }
  0x6d   : > { %s491_s28 = sshll.u32 %s2367_s23, 4  ;;  %s492_s28 = int_to_ptr.vmem [resolvable:$true] %s491_s28 }
  0x72   : > { %s2228_s17 = scalar_lea.hbm %s2960_s9, 16 }
  0x73   : > { %p2229_p13 = scmp.ne.s32.totalorder %s2960_s9, %s2228_s17  ;;  %p2235_p5 = scmp.lt.u32.totalorder %s2228_s17, %s2960_s9 }
  0x75   : > { %p2231_p0 = pnand %p2229_p13, %p2518_p8 }
  0x77   : > { %p2232_p2 = pneg %p2231_p0 }
  0x79   : > { %p2237_p7 = pnand %p2235_p5, %p2232_p2 }
  0x7b   : > { %2240 = shalt.err (!%p2237_p7)
}
  0x7c   : > { %s2241_s20 = scalar_lea.vmem %s492_s28, 16  ;;  %s2248_s12 = scalar_lea.vmem %s492_s28, 32 }
  0x7d   : > { %p2242_p9 = scmp.ne.s32.totalorder %s492_s28, %s2241_s20  ;;  %p2249_p12 = scmp.lt.s32.totalorder %s492_s28, %s492_s28 }
  0x7e   : > { %p2250_p4 = scmp.lt.s32.totalorder %s2248_s12, %s2241_s20 }
  0x7f   : > { %p2244_p10 = pnand %p2242_p9, %p2518_p8 }
  0x80   : > { %p2251_p1 = por %p2250_p4, %p2249_p12 }
  0x81   : > { %p2245_p11 = pneg %p2244_p10 }
  0x83   : > { %p2252_p3 = pnand %p2251_p1, %p2245_p11 }
  0x85   : > { %2255 = shalt.err (!%p2252_p3)
}
  0x86   : > { %2048 = dma.hbm_to_vmem [thread:$0]  (!%p2504_p6), %s2960_s9, 16, %s492_s28, [#allocation9]  }
  0x87   : > { %s1800_s6 = sadd.s32 4294967294, %s2360_s27   ;;  %s2607_s8 = sadd.s32 1, %s2360_s27  }
  0x88   : > { %s39_s21 = ssub.s32 %s2360_s27, %s2607_s8  ;;  %s42_s18 = sadd.s32 1, %s2356_s26 }
  0x89   : > { %p40_p1 = scmp.eq.s32.totalorder %s39_s21, 0  ;;  %p49_p3 = scmp.ne.s32.totalorder %s2356_s26, %s2352_s25 }
  0x8a   : > { %p50_p8 = scmp.eq.s32.totalorder %s2360_s27, 0  ;;  %p55_p13 = scmp.ne.s32.totalorder %s2352_s25, %s2348_s24 }
  0x8b   : > { %s2618_s22 = scalar_select %p40_p1, %s2356_s26, %s42_s18  }
  0x8c   : > { %p2620_p0 = por %p50_p8, %p49_p3  ;;  %p2962_p2 = scmp.eq.s32.totalorder %s2486_s0, 0 }
  0x8d   : > { %p415_p5 = scmp.eq.s32.totalorder %s2486_s0, 1  ;;  %p421_p7 = scmp.eq.s32.totalorder %s1800_s6, 1 }
  0x8e   : > { %p2626_p6 = por %p2962_p2, %p55_p13  ;;  %p2061_p9 = scmp.lt.s32.totalorder %s2360_s27, 2 }
  0x8f   : > { %s523_s1 = sand.u32 1, %s2356_s26   ;;  %p2633_p10 = por %p415_p5, %p49_p3 }
  0x90   : > { %p2637_p11 = por %p421_p7, %p55_p13  ;;  %s1807_s29 = sshll.u32 %s523_s1, 2 }
  0x91   : > { %s2964_s16 = scalar_select %p2633_p10, 1, 0 }
  0x92   : > { %s2965_s17 = scalar_select %p2637_p11, 1, 0 }
  0x93   : > { %s1808_s19 = sshll.u32 %s2360_s27, 6  ;;  %s2966_s14 = sld [smem:[#allocation16_spill]] }
  0x94   : > { %s527_s6 = scalar_lea.vmem [#allocation2], %s1807_s29  ;;  %p2651_p12 = pnand %p2061_p9, %p2620_p0 }
  0x95   : > { %s534_s21 = sshll.u32 %s527_s6, 4  ;;  %s524_s7 = scalar_lea.sflag [#allocation3], %s523_s1  ;;  %s2647_s21 = int_to_ptr.vmem [resolvable:$true] %s534_s21 }
  0x96   : > { %p2258_p1 = pneg %p2651_p12 }
  0x99   : > { %s2645_s15 = scalar_lea.hbm %s2966_s14, %s1808_s19  ;;  %s2261_s20 = scalar_lea.hbm %s2966_s14, 128 }
  0x9a   : > { %s2256_s9 = scalar_lea.hbm %s2645_s15, 64  ;;  %p2262_p13 = scmp.lt.u32.totalorder %s2645_s15, %s2966_s14 }
  0x9b   : > { %p2257_p4 = scmp.ne.s32.totalorder %s2645_s15, %s2256_s9  ;;  %p2263_p0 = scmp.lt.u32.totalorder %s2261_s20, %s2256_s9 }
  0x9c   : > { %p2265_p5 = scmp.lt.u32.totalorder %s2256_s9, %s2645_s15 }
  0x9d   : > { %p2259_p3 = pnand %p2258_p1, %p2257_p4  ;;  %p2264_p2 = por %p2263_p0, %p2262_p13 }
  0x9f   : > { %p2260_p8 = pneg %p2259_p3  ;;  %p2266_p7 = por %p2265_p5, %p2264_p2 }
  0xa1   : > { %p2267_p9 = pnand %p2266_p7, %p2260_p8 }
  0xa3   : > { %2270 = shalt.err (!%p2267_p9)
}
  0xa4   : > { %s2271_s1 = scalar_lea.vmem %s2647_s21, 64  ;;  %s2368_s6 = smov [#allocation2]  }
  0xa5   : > { %p2272_p4 = scmp.ne.s32.totalorder %s2647_s21, %s2271_s1  ;;  %s2276_s29 = sshll.u32 %s2368_s6, 4  ;;  %s2277_s29 = int_to_ptr.vmem [resolvable:$false] %s2276_s29 }
  0xa6   : > { %s2278_s19 = scalar_lea.vmem %s2277_s29, 128  ;;  %p2279_p10 = scmp.lt.s32.totalorder %s2647_s21, %s2277_s29 }
  0xa7   : > { %p2274_p3 = pnand %p2272_p4, %p2258_p1  ;;  %p2280_p13 = scmp.lt.s32.totalorder %s2278_s19, %s2271_s1 }
  0xa9   : > { %p2275_p11 = pneg %p2274_p3  ;;  %p2281_p0 = por %p2280_p13, %p2279_p10 }
  0xab   : > { %p2282_p2 = pnand %p2281_p0, %p2275_p11 }
  0xad   : > { %2285 = shalt.err (!%p2282_p2)
}
  0xae   : > { %2052 = dma.hbm_to_vmem [thread:$0]  (!%p2651_p12), %s2645_s15, 64, %s2647_s21, %s524_s7  }
  0xaf   : > { %p2968_p8 = scmp.ne.s32.totalorder %s2954_s30, 0 }
  0xb0   : > { %s2683_s9 = sand.u32 (!%p2968_p8), 1, %s2352_s25  }
  0xb1   : > { %543 = sbr.rel (%p2968_p8) target bundleno = 2610 (0xa32), region = 88  ;;  %s1810_s20 = sshll.u32 (!%p2968_p8), %s2683_s9, 2 }
  0xb2   : > { %s546_s23 = scalar_lea.sflag (!%p2968_p8), [#allocation3], %s2683_s9  ;;  %s549_s12 = scalar_lea.vmem (!%p2968_p8), [#allocation2], %s1810_s20 }
  0xb8   : > { %2331 = dma.done.wait (%p2626_p6), %s546_s23, 64  }
  0xb9   : > { %2333 = vsyncadd (%p2626_p6), %s546_s23, 4294967232  ;;  %p2969_p10 = scmp.eq.s32.totalorder %s2486_s0, 0 }
  0xbb   : > { %2335 = dma.done.wait (%p2969_p10), [#allocation6], 272   ;;  %p2970_p11 = pmov %p2969_p10 }
  0xbc   : > { %p2971_p12 = pmov %p2969_p10 }
  0xbd   : > { %2337 = vsyncadd (%p2970_p11), [#allocation6], 4294967024 }
  0xbe   : > { %2339 = dma.done.wait (%p2971_p12), [#allocation9], 32   ;;  %p2972_p1 = pmov %p2969_p10 }
  0xbf   : > { %v2369_v0 = vmov 0.0   ;;  %vm2370_vm0 = vmmov 0   ;;  %s2973_s28 = sld [smem:[#allocation17_spill]]  ;;  %v617_v3 = vld [vmem:[%s549_s12] sm:$0xf]  ;;  %vm641_vm1 = vcmask 261120  }
  0xc0   : > { %2341 = vsyncadd (%p2972_p1), [#allocation9], 4294967264  ;;  %1900 = vmatprep.subr.bf16.mxu1 %v2369_v0  ;;  %1904 = vmatprep.mubr.msk.bf16.mxu1 %vm2370_vm0, %v2369_v0  ;;  %s2974_s3 = sld [smem:[#allocation19_spill]]  ;;  %v2114_v6 = vld [vmem:[%s2922_s5] sm:$0xff]   ;;  %v2115_v7 = vld [vmem:[%s2922_s5 + $0x8] sm:$0xff]   ;;  %s2975_s2 = sld [smem:[#allocation18_spill]] }
  0xc1   : > { %1916 = vmatprep.subr.bf16.mxu0 %v2369_v0  ;;  %1920 = vmatprep.mubr.msk.bf16.mxu0 %vm2370_vm0, %v2369_v0  ;;  %s2371_s15 = smov 120   ;;  %v1820_v15 = vld [vmem:[%s2921_s4] ss:$0 sm:$0xff]  ;;  %vm835_vm2 = vcmask 64512   ;;  %s2372_s1 = smov 104   ;;  %vm1071_vm3 = vcmask 1043456  }
  0xc2   : > { %1917 = vmatpush3.bf16.msra.mxu0 %v2114_v6  ;;  %s2373_s6 = smov 112   ;;  %v1824_v32 = vld [vmem:[#allocation5] ss:$0 sm:$0xff]  ;;  %s2976_s12 = sld [smem:[#allocation24_spill]]  ;;  %vm1603_vm4 = vcmask 523264  }
  0xc3   : > { %1918 = vmatprep.subr.bf16.mxu0 %v2369_v0  ;;  %s1815_s21 = sshll.u32 %s2683_s9, 3  ;;  %s2979_s20 = sld [smem:[#allocation27_spill]] }
  0xc4   : > { %s1856_s23 = sshll.u32 %s2486_s0, 7  ;;  %s1679_s18 = scalar_lea.sflag [#allocation4], %s2683_s9 }
  0xc5   : > { %v2110_v1 = vld [vmem:[%s2973_s28] sm:$0xff]   ;;  %v2111_v2 = vld [vmem:[%s2973_s28 + $0x8] sm:$0xff]   ;;  %p2981_p5 = scmp.ne.s32.totalorder %s2964_s16, 0  ;;  %s2374_s0 = smov [#allocation11]  }
  0xc6   : > { %1901 = vmatpush3.bf16.msra.mxu1 %v2110_v1  ;;  %v2112_v4 = vld [vmem:[%s2974_s3] sm:$0xff]   ;;  %v2113_v5 = vld [vmem:[%s2974_s3 + $0x8] sm:$0xff]   ;;  %1919 = vmatpush3.bf16.msra.mxu0 %v2115_v7 }
  0xc7   : > { %1902 = vmatprep.subr.bf16.mxu1 %v2369_v0  ;;  %1930 = vmatprep.subr.bf16.mxu0 %v2369_v0  ;;  %v1816_v8 = vld [vmem:[%s2975_s2] ss:$0 sm:$0xff]  ;;  %s2980_s2 = sld [smem:[#allocation28_spill]] }
  0xc9   : > { %1921 = vmatmul.mubr.msk.bf16.vlgmr.msra.gmra.mrb[0].mxu0 %vm641_vm1, %v617_v3 }
  0xca   : > { %1903 = vmatpush3.bf16.msra.mxu1 %v2111_v2  ;;  %1932 = vmatprep.mubr.msk.bf16.mxu0 %vm2370_vm0, %v2369_v0 }
  0xcb   : > { %1908 = vmatprep.subr.bf16.mxu1 %v2369_v0 }
  0xcd   : > { %1905 = vmatmul.mubr.msk.bf16.vlgmr.msra.gmra.mrb[0].mxu1 %vm641_vm1, %v617_v3  ;;  %s2872_s3 = scalar_lea.hbm %s2980_s2, %s1856_s23 }
  0xce   : > { %1909 = vmatpush3.bf16.msra.mxu1 %v2112_v4  ;;  %1912 = vmatprep.mubr.msk.bf16.mxu1 %vm2370_vm0, %v2369_v0 }
  0xcf   : > { %1910 = vmatprep.subr.bf16.mxu1 %v2369_v0 }
  0xd2   : > { %1911 = vmatpush3.bf16.msra.mxu1 %v2113_v5 }
  0xd3   : > { %1924 = vmatprep.subr.bf16.mxu1 %v2369_v0 }
  0xd5   : > { %1913 = vmatmul.mubr.msk.bf16.vlgmr.msra.gmra.mrb[4].mxu1 %vm641_vm1, %v617_v3 }
  0xd6   : > { %1926 = vmatprep.mubr.msk.bf16.mxu1 %vm2370_vm0, %v2369_v0 }
 0x19c   : > { %v805_v33 = vpop.f32.mrb[0].mxu0 }
 0x19d   : > { %v806_v34 = vadd.f32 %v1824_v32, %v805_v33  ;;  %v1922_v35 = vpop.f32.mrb[1].mxu0  ;;  %v1257_v33 = vld [vmem:[#allocation7] sm:$0xf] }
 0x19e   : > { %v808_v36 = vpop.f32.mrb[2].mxu0 }
 0x19f   : > { %v827_v37 = vpack.c.bf16 %v806_v34, %v806_v34  ;;  %v1923_v38 = vpop.f32.mrb[3].mxu0 }
 0x1a0   : > { %v679_v9 = vpop.f32.mrb[0].mxu1 }
 0x1a1   : > { %v680_v10 = vadd.f32 %v1816_v8, %v679_v9  ;;  %v1906_v11 = vpop.f32.mrb[1].mxu1  ;;  %v1073_v39 = vsel %vm1071_vm3, %v827_v37, 0 }
 0x1a2   : > { %v682_v12 = vpop.f32.mrb[2].mxu1 }
 0x1a3   : > { %v811_v13 = vpack.c.bf16 %v680_v10, %v680_v10  ;;  %v1907_v14 = vpop.f32.mrb[3].mxu1 }
 0x1a5   : > { %813 = vrot.lane.b32.xlu1 %v811_v13, %s2371_s15 }
 0x1a8   : > { %v742_v16 = vpop.f32.mrb[4].mxu1 }
 0x1a9   : > { %v743_v17 = vadd.f32 %v1820_v15, %v742_v16  ;;  %v1914_v18 = vpop.f32.mrb[5].mxu1 }
 0x1aa   : > { %v745_v19 = vpop.f32.mrb[6].mxu1 }
 0x1ab   : > { %v819_v20 = vpack.c.bf16 %v743_v17, %v743_v17  ;;  %v1915_v21 = vpop.f32.mrb[7].mxu1 }
 0x1ad   : > { %825 = vrot.lane.b32.xlu1 %v819_v20, %s2372_s1  ;;  %821 = vrot.lane.b32.xlu0 %v819_v20, %s2371_s15  ;;  %v840_v22 = vsel %vm835_vm2, %v819_v20, 0 }
 0x1ae   : > { %1925 = vmatpush3.bf16.xpose.msra.mxu1 %v840_v22 }
 0x1af   : > { %1936 = vmatprep.subr.bf16.mxu1 %v2369_v0 }
 0x1b1   : > { %817 = vrot.lane.b32.xlu1 %v811_v13, %s2372_s1  ;;  %823 = vrot.lane.b32.xlu0 %v819_v20, %s2373_s6 }
 0x1b5   : > { %815 = vrot.lane.b32.xlu0 %v811_v13, %s2373_s6  ;;  %1927 = vmatmul.mubr.msk.bf16.vlgmr.msra.gmra.mrb[8].mxu1 %vm835_vm2, %v811_v13 }
 0x1b6   : > { %1938 = vmatprep.mubr.msk.bf16.mxu1 %vm2370_vm0, %v2369_v0 }
 0x217   : > { %v814_v25 = vpop.permute.xlu1 %813 }
 0x21f   : > { %v822_v23 = vpop.permute.xlu0 %821  ;;  %v826_v28 = vpop.permute.xlu1 %825 }
 0x220   : > { %v886_v24 = vsel %vm835_vm2, %v822_v23, 0  ;;  %v978_v29 = vsel %vm835_vm2, %v826_v28, 0 }
 0x221   : > { %1931 = vmatpush3.bf16.xpose.msra.mxu0 %v886_v24 }
 0x222   : > { %1942 = vmatprep.subr.bf16.mxu0 %v2369_v0 }
 0x223   : > { %v824_v26 = vpop.permute.xlu0 %823  ;;  %v818_v31 = vpop.permute.xlu1 %817 }
 0x224   : > { %v932_v27 = vsel %vm835_vm2, %v824_v26, 0 }
 0x225   : > { %1937 = vmatpush3.bf16.xpose.msra.mxu1 %v932_v27 }
 0x226   : > { %1948 = vmatprep.subr.bf16.mxu1 %v2369_v0 }
 0x227   : > { %v816_v30 = vpop.permute.xlu0 %815 }
 0x228   : > { %1933 = vmatmul.mubr.msk.bf16.vlgmr.msra.gmra.mrb[4].mxu0 %vm835_vm2, %v814_v25 }
 0x229   : > { %1943 = vmatpush3.bf16.xpose.msra.mxu0 %v978_v29  ;;  %1944 = vmatprep.mubr.msk.bf16.mxu0 %vm2370_vm0, %v2369_v0 }
 0x22a   : > { %1954 = vmatprep.subr.bf16.mxu0 %v2369_v0 }
 0x22c   : > { %1939 = vmatmul.mubr.msk.bf16.vlgmr.msra.gmra.mrb[12].mxu1 %vm835_vm2, %v816_v30 }
 0x22d   : > { %1950 = vmatprep.mubr.msk.bf16.mxu1 %vm2370_vm0, %v2369_v0  ;;  %1949 = vmatpush3.bf16.msra.mxu1 %v1073_v39  ;;  %v1258_v39 = vld [vmem:[#allocation7 + $0x4] sm:$0xf] }
 0x22e   : > { %1960 = vmatprep.subr.bf16.mxu1 %v2369_v0 }
 0x230   : > { %1945 = vmatmul.mubr.msk.bf16.vlgmr.msra.gmra.mrb[8].mxu0 %vm835_vm2, %v818_v31 }
 0x231   : > { %1956 = vmatprep.mubr.msk.bf16.mxu0 %vm2370_vm0, %v2369_v0 }
 0x288   : > { %v876_v40 = vpop.f32.mrb[8].mxu1 }
 0x289   : > { %v1928_v41 = vpop.f32.mrb[9].mxu1  ;;  %v1020_v42 = vsel %vm835_vm2, %v876_v40, -inf }
 0x28a   : > { %1021 = vmax.xlane.f32.xlu0 %v1020_v42  ;;  %v879_v43 = vpop.f32.mrb[10].mxu1  ;;  %v1311_v42 = vsel %vm1071_vm3, %v1258_v39, 0 }
 0x28b   : > { %v1929_v44 = vpop.f32.mrb[11].mxu1  ;;  %v1259_v43 = vld [vmem:[#allocation7 + $0x8] sm:$0xf] }
 0x2fb   : > { %v922_v45 = vpop.f32.mrb[4].mxu0 }
 0x2fc   : > { %v1934_v46 = vpop.f32.mrb[5].mxu0  ;;  %v1023_v47 = vsel %vm835_vm2, %v922_v45, -inf }
 0x2fd   : > { %1024 = vmax.xlane.f32.xlu1 %v1023_v47  ;;  %v925_v48 = vpop.f32.mrb[6].mxu0  ;;  %v1357_v47 = vsel %vm1071_vm3, %v1259_v43, 0  ;;  %v1842_v43 = vld [vmem:[%s2927_s10] ss:$0 sm:$0xff] }
 0x2fe   : > { %v1935_v49 = vpop.f32.mrb[7].mxu0 }
 0x2ff   : > { %v968_v50 = vpop.f32.mrb[12].mxu1 }
 0x300   : > { %v1940_v51 = vpop.f32.mrb[13].mxu1  ;;  %v1026_v52 = vsel %vm835_vm2, %v968_v50, -inf }
 0x301   : > { %1027 = vmax.xlane.f32.xlu0 %v1026_v52  ;;  %v971_v53 = vpop.f32.mrb[14].mxu1 }
 0x302   : > { %v1941_v54 = vpop.f32.mrb[15].mxu1 }
 0x303   : > { %v1014_v55 = vpop.f32.mrb[8].mxu0 }
 0x304   : > { %v1946_v56 = vpop.f32.mrb[9].mxu0  ;;  %v1029_v57 = vsel %vm835_vm2, %v1014_v55, -inf }
 0x305   : > { %v1017_v58 = vpop.f32.mrb[10].mxu0  ;;  %1030 = vmax.xlane.f32.xlu0 %v1029_v57 }
 0x306   : > { %v1947_v59 = vpop.f32.mrb[11].mxu0 }
 0x30e   : > { %829 = vrot.lane.b32.xlu1 %v827_v37, %s2371_s15  ;;  %s2977_s15 = sld [smem:[#allocation25_spill]] }
 0x317   : > { %v1022_v60 = vpop.xlane.xlu0 %1021 }
 0x318   : > { %v1032_v61 = vsub.f32 %v876_v40, %v1022_v60 }
 0x31a   : > { %v1036_v62 = vmul.f32 1.442695, %v1032_v61 }
 0x31c   : > { %2122 = vpow2.f32 %v1036_v62 }
 0x326   : > { %v2123_v63 = vpop.eup %2122 }
 0x327   : > { %v1044_v1 = vsel %vm835_vm2, %v2123_v63, 0.0 }
 0x332   : > { %1045 = vadd.xlane.f32.xlu1 %v1044_v1 }
 0x38a   : > { %v1025_v2 = vpop.xlane.xlu1 %1024 }
 0x38b   : > { %v1033_v3 = vsub.f32 %v922_v45, %v1025_v2 }
 0x38d   : > { %v1038_v4 = vmul.f32 1.442695, %v1033_v3 }
 0x38e   : > { %v830_v5 = vpop.permute.xlu1 %829  ;;  %v1028_v6 = vpop.xlane.xlu0 %1027 }
 0x38f   : > { %2124 = vpow2.f32 %v1038_v4  ;;  %v1119_v7 = vsel %vm1071_vm3, %v830_v5, 0  ;;  %v1034_v8 = vsub.f32 %v968_v50, %v1028_v6  ;;  %v1260_v50 = vld [vmem:[#allocation7 + $0xc] sm:$0xf] }
 0x390   : > { %1955 = vmatpush3.bf16.msra.mxu0 %v1119_v7  ;;  %v1403_v54 = vsel %vm1071_vm3, %v1260_v50, 0  ;;  %v2121_v50 = vld [vmem:[%s2930_s13 + $0x18] sm:$0xff]  }
 0x391   : > { %v1040_v9 = vmul.f32 1.442695, %v1034_v8  ;;  %1966 = vmatprep.subr.bf16.mxu0 %v2369_v0 }
 0x392   : > { %v1031_v10 = vpop.xlane.xlu0 %1030 }
 0x393   : > { %2126 = vpow2.f32 %v1040_v9  ;;  %v1035_v11 = vsub.f32 %v1014_v55, %v1031_v10 }
 0x395   : > { %v1042_v12 = vmul.f32 1.442695, %v1035_v11 }
 0x397   : > { %2128 = vpow2.f32 %v1042_v12 }
 0x399   : > { %v2125_v13 = vpop.eup %2124 }
 0x39a   : > { %v1047_v14 = vsel %vm835_vm2, %v2125_v13, 0.0 }
 0x39b   : > { %1048 = vadd.xlane.f32.xlu0 %v1047_v14 }
 0x39d   : > { %v2127_v15 = vpop.eup %2126 }
 0x39e   : > { %v1050_v16 = vsel %vm835_vm2, %v2127_v15, 0.0 }
 0x39f   : > { %1051 = vadd.xlane.f32.xlu1 %v1050_v16 }
 0x3a1   : > { %v2129_v17 = vpop.eup %2128 }
 0x3a2   : > { %v1053_v18 = vsel %vm835_vm2, %v2129_v17, 0.0 }
 0x3a3   : > { %1054 = vadd.xlane.f32.xlu0 %v1053_v18 }
 0x3b0   : > { %833 = vrot.lane.b32.xlu1 %v827_v37, %s2372_s1 }
 0x3b9   : > { %831 = vrot.lane.b32.xlu0 %v827_v37, %s2373_s6  ;;  %v1265_v37 = vsel %vm1071_vm3, %v1257_v33, 0  ;;  %s2978_s6 = sld [smem:[#allocation26_spill]] }
 0x3bf   : > { %v1046_v19 = vpop.xlane.xlu1 %1045 }
 0x3c0   : > { %2130 = vrcp.f32 %v1046_v19 }
 0x3ca   : > { %v2131_v20 = vpop.eup %2130 }
 0x3cb   : > { %v1060_v21 = vmul.f32 %v2131_v20, %v2123_v63 }
 0x3cd   : > { %v1064_v22 = vpack.c.bf16 %v1060_v21, %v1060_v21 }
 0x3cf   : > { %1951 = vmatmul.mubr.msk.bf16.vlgmr.msra.gmra.mrb[16].mxu1 %vm835_vm2, %v1064_v22 }
 0x3d0   : > { %1962 = vmatprep.mubr.msk.bf16.mxu1 %vm2370_vm0, %v2369_v0 }
 0x428   : > { %v1049_v23 = vpop.xlane.xlu0 %1048 }
 0x429   : > { %2132 = vrcp.f32 %v1049_v23 }
 0x42c   : > { %v1052_v24 = vpop.xlane.xlu1 %1051 }
 0x42d   : > { %2134 = vrcp.f32 %v1052_v24  ;;  %v1840_v24 = vld [vmem:[#allocation8] ss:$0 sm:$0xff] }
 0x430   : > { %v1055_v25 = vpop.xlane.xlu0 %1054  ;;  %v834_v29 = vpop.permute.xlu1 %833 }
 0x431   : > { %2136 = vrcp.f32 %v1055_v25  ;;  %v1211_v35 = vsel %vm1071_vm3, %v834_v29, 0 }
 0x433   : > { %v2133_v26 = vpop.eup %2132 }
 0x434   : > { %v1061_v27 = vmul.f32 %v2133_v26, %v2125_v13  ;;  %v832_v28 = vpop.permute.xlu0 %831 }
 0x435   : > { %v1165_v30 = vsel %vm1071_vm3, %v832_v28, 0 }
 0x436   : > { %1961 = vmatpush3.bf16.msra.mxu1 %v1165_v30  ;;  %v1065_v31 = vpack.c.bf16 %v1061_v27, %v1061_v27 }
 0x437   : > { %v2135_v32 = vpop.eup %2134  ;;  %1972 = vmatprep.subr.bf16.mxu1 %v2369_v0 }
 0x438   : > { %v1062_v34 = vmul.f32 %v2135_v32, %v2127_v15  ;;  %1957 = vmatmul.mubr.msk.bf16.vlgmr.msra.gmra.mrb[12].mxu0 %vm835_vm2, %v1065_v31 }
 0x439   : > { %1967 = vmatpush3.bf16.msra.mxu0 %v1211_v35  ;;  %1968 = vmatprep.mubr.msk.bf16.mxu0 %vm2370_vm0, %v2369_v0  ;;  %v2116_v35 = vld [vmem:[%s2928_s11] sm:$0xff]  }
 0x43a   : > { %v1066_v36 = vpack.c.bf16 %v1062_v34, %v1062_v34  ;;  %1978 = vmatprep.subr.bf16.mxu0 %v2369_v0 }
 0x43b   : > { %v2137_v38 = vpop.eup %2136 }
 0x43c   : > { %v1063_v40 = vmul.f32 %v2137_v38, %v2129_v17  ;;  %1963 = vmatmul.mubr.msk.bf16.vlgmr.msra.gmra.mrb[20].mxu1 %vm835_vm2, %v1066_v36  ;;  %v2117_v36 = vld [vmem:[%s2928_s11 + $0x8] sm:$0xff]  }
 0x43d   : > { %1973 = vmatpush3.bf16.msra.mxu1 %v1265_v37  ;;  %1974 = vmatprep.mubr.msk.bf16.mxu1 %vm2370_vm0, %v2369_v0 }
 0x43e   : > { %v1067_v41 = vpack.c.bf16 %v1063_v40, %v1063_v40  ;;  %1984 = vmatprep.subr.bf16.mxu1 %v2369_v0 }
 0x440   : > { %1969 = vmatmul.mubr.msk.bf16.vlgmr.msra.gmra.mrb[16].mxu0 %vm835_vm2, %v1067_v41  ;;  %v1841_v41 = vld [vmem:[#allocation10] ss:$0 sm:$0xff] }
 0x441   : > { %1979 = vmatpush3.bf16.msra.mxu0 %v1311_v42  ;;  %1980 = vmatprep.mubr.msk.bf16.mxu0 %vm2370_vm0, %v2369_v0 }
 0x442   : > { %1990 = vmatprep.subr.bf16.mxu0 %v2369_v0 }
 0x4a2   : > { %v1109_v44 = vpop.f32.mrb[16].mxu1 }
 0x4a3   : > { %v1253_v45 = vpack.c.bf16 %v1109_v44, %v1109_v44  ;;  %v1952_v46 = vpop.f32.mrb[17].mxu1 }
 0x4a4   : > { %v1112_v48 = vpop.f32.mrb[18].mxu1 }
 0x4a5   : > { %v1953_v49 = vpop.f32.mrb[19].mxu1  ;;  %1975 = vmatmul.mubr.msk.bf16.vlgmr.msra.gmra.mrb[24].mxu1 %vm835_vm2, %v1253_v45  ;;  %v2119_v48 = vld [vmem:[%s2930_s13 + $0x8] sm:$0xff]  }
 0x4a6   : > { %1985 = vmatpush3.bf16.msra.mxu1 %v1357_v47  ;;  %1986 = vmatprep.mubr.msk.bf16.mxu1 %vm2370_vm0, %v2369_v0  ;;  %v2118_v47 = vld [vmem:[%s2930_s13] sm:$0xff]   ;;  %v2120_v49 = vld [vmem:[%s2930_s13 + $0x10] sm:$0xff]  }
 0x4a7   : > { %1996 = vmatprep.subr.bf16.mxu1 %v2369_v0 }
 0x50b   : > { %v1155_v51 = vpop.f32.mrb[12].mxu0 }
 0x50c   : > { %v1254_v52 = vpack.c.bf16 %v1155_v51, %v1155_v51  ;;  %v1958_v53 = vpop.f32.mrb[13].mxu0  ;;  %v1843_v51 = vld [vmem:[%s2976_s12] ss:$0 sm:$0xff]  ;;  %s615_s12 = scalar_lea.vmem [#allocation11], %s1815_s21  ;;  %s2290_s21 = sshll.u32 %s2374_s0, 4  ;;  %s2291_s21 = int_to_ptr.vmem [resolvable:$false] %s2290_s21 }
 0x50d   : > { %v1158_v55 = vpop.f32.mrb[14].mxu0  ;;  %s1692_s7 = sshll.u32 %s615_s12, 4  ;;  %s2874_s7 = int_to_ptr.vmem [resolvable:$true] %s1692_s7 }
 0x50e   : > { %v1959_v56 = vpop.f32.mrb[15].mxu0  ;;  %1981 = vmatmul.mubr.msk.bf16.vlgmr.msra.gmra.mrb[20].mxu0 %vm835_vm2, %v1254_v52  ;;  %s2286_s1 = scalar_lea.vmem %s2874_s7, 128  ;;  %p2293_p4 = scmp.lt.s32.totalorder %s2874_s7, %s2291_s21 }
 0x50f   : > { %v1201_v57 = vpop.f32.mrb[20].mxu1  ;;  %1991 = vmatpush3.bf16.msra.mxu0 %v1403_v54  ;;  %1992 = vmatprep.mubr.msk.bf16.mxu0 %vm2370_vm0, %v2369_v0  ;;  %p2287_p6 = scmp.ne.s32.totalorder %s2874_s7, %s2286_s1 }
 0x510   : > { %v1255_v58 = vpack.c.bf16 %v1201_v57, %v1201_v57  ;;  %v1964_v59 = vpop.f32.mrb[21].mxu1  ;;  %2004 = vmatprep.subr.bf16.mxu0 %v2369_v0 }
 0x511   : > { %v1204_v60 = vpop.f32.mrb[22].mxu1  ;;  %p2288_p7 = pnand %p2287_p6, %p2981_p5 }
 0x512   : > { %v1965_v61 = vpop.f32.mrb[23].mxu1  ;;  %1987 = vmatmul.mubr.msk.bf16.vlgmr.msra.gmra.mrb[28].mxu1 %vm835_vm2, %v1255_v58 }
 0x513   : > { %v1247_v62 = vpop.f32.mrb[16].mxu0  ;;  %2000 = vmatprep.mubr.msk.bf16.mxu1 %vm2370_vm0, %v2369_v0  ;;  %1997 = vmatpush3.bf16.msra.mxu1 %v2116_v35  ;;  %p2289_p9 = pneg %p2288_p7 }
 0x514   : > { %v1256_v63 = vpack.c.bf16 %v1247_v62, %v1247_v62  ;;  %v1970_v1 = vpop.f32.mrb[17].mxu0  ;;  %1998 = vmatprep.subr.bf16.mxu1 %v2369_v0  ;;  %v1847_v62 = vld [vmem:[%s2977_s15] ss:$0 sm:$0xff] }
 0x515   : > { %v1250_v2 = vpop.f32.mrb[18].mxu0 }
 0x516   : > { %v1971_v3 = vpop.f32.mrb[19].mxu0  ;;  %1993 = vmatmul.mubr.msk.bf16.vlgmr.msra.gmra.mrb[24].mxu0 %vm835_vm2, %v1256_v63 }
 0x517   : > { %2012 = vmatprep.mubr.msk.bf16.mxu0 %vm2370_vm0, %v2369_v0  ;;  %1999 = vmatpush3.bf16.msra.mxu1 %v2117_v36 }
 0x518   : > { %2005 = vmatpush3.bf16.msra.mxu0 %v2118_v47 }
 0x519   : > { %2006 = vmatprep.subr.bf16.mxu0 %v2369_v0 }
 0x51c   : > { %2007 = vmatpush3.bf16.msra.mxu0 %v2119_v48 }
 0x51d   : > { %2008 = vmatprep.subr.bf16.mxu0 %v2369_v0 }
 0x520   : > { %2009 = vmatpush3.bf16.msra.mxu0 %v2120_v49 }
 0x521   : > { %2010 = vmatprep.subr.bf16.mxu0 %v2369_v0 }
 0x524   : > { %2011 = vmatpush3.bf16.msra.mxu0 %v2121_v50 }
 0x578   : > { %v1301_v4 = vpop.f32.mrb[24].mxu1 }
 0x579   : > { %v1976_v5 = vpop.f32.mrb[25].mxu1  ;;  %v1445_v9 = vsel %vm641_vm1, %v1301_v4, 0.0 }
 0x57a   : > { %v1304_v6 = vpop.f32.mrb[26].mxu1 }
 0x57b   : > { %v1977_v7 = vpop.f32.mrb[27].mxu1 }
 0x5e1   : > { %v1347_v8 = vpop.f32.mrb[20].mxu0 }
 0x5e2   : > { %v1446_v10 = vsel %vm641_vm1, %v1347_v8, 0.0  ;;  %v1982_v11 = vpop.f32.mrb[21].mxu0 }
 0x5e3   : > { %v1447_v12 = vadd.f32 %v1446_v10, %v1445_v9  ;;  %v1350_v13 = vpop.f32.mrb[22].mxu0 }
 0x5e4   : > { %v1983_v14 = vpop.f32.mrb[23].mxu0 }
 0x5e5   : > { %v1393_v15 = vpop.f32.mrb[28].mxu1 }
 0x5e6   : > { %v1448_v16 = vsel %vm641_vm1, %v1393_v15, 0.0  ;;  %v1988_v17 = vpop.f32.mrb[29].mxu1 }
 0x5e7   : > { %v1449_v18 = vadd.f32 %v1448_v16, %v1447_v12  ;;  %v1396_v19 = vpop.f32.mrb[30].mxu1  ;;  %v1853_v16 = vld [vmem:[%s2978_s6] ss:$0 sm:$0xff]  ;;  %s2292_s6 = scalar_lea.vmem %s2291_s21, 256 }
 0x5e8   : > { %v1989_v20 = vpop.f32.mrb[31].mxu1  ;;  %p2294_p3 = scmp.lt.s32.totalorder %s2292_s6, %s2286_s1 }
 0x5e9   : > { %v1439_v21 = vpop.f32.mrb[24].mxu0 }
 0x5ea   : > { %v1450_v22 = vsel %vm641_vm1, %v1439_v21, 0.0  ;;  %v1994_v23 = vpop.f32.mrb[25].mxu0  ;;  %p2295_p13 = por %p2294_p3, %p2293_p4 }
 0x5eb   : > { %v1451_v25 = vadd.f32 %v1450_v22, %v1449_v18  ;;  %v1442_v26 = vpop.f32.mrb[26].mxu0  ;;  %v1854_v18 = vld [vmem:[%s2979_s20] ss:$0 sm:$0xff] }
 0x5ec   : > { %v1995_v27 = vpop.f32.mrb[27].mxu0  ;;  %p2296_p0 = pnand %p2295_p13, %p2289_p9 }
 0x5ed   : > { %v1459_v28 = vadd.f32 %v1840_v24, %v1451_v25 }
 0x5ef   : > { %v1462_v29 = vsel %vm641_vm1, %v1459_v28, 0.0 }
 0x5f0   : > { %1463 = vadd.xlane.f32.xlu1 %v1462_v29 }
 0x67d   : > { %v1464_v30 = vpop.xlane.xlu1 %1463 }
 0x67e   : > { %v1466_v31 = vmul.f32 0.03125, %v1464_v30 }
 0x680   : > { %v1467_v32 = vsub.f32 %v1459_v28, %v1466_v31 }
 0x682   : > { %v1468_v33 = vmul.f32 %v1467_v32, %v1467_v32 }
 0x684   : > { %v1469_v34 = vsel %vm641_vm1, %v1468_v33, 0.0 }
 0x685   : > { %1470 = vadd.xlane.f32.xlu0 %v1469_v34 }
 0x712   : > { %v1471_v37 = vpop.xlane.xlu0 %1470 }
 0x713   : > { %v1472_v38 = vmul.f32 0.03125, %v1471_v37 }
 0x715   : > { %v1473_v39 = vadd.f32 1e-12, %v1472_v38 }
 0x717   : > { %2138 = vrsqrt.f32 %v1473_v39 }
 0x721   : > { %v2139_v40 = vpop.eup %2138 }
 0x722   : > { %v1475_v42 = vmul.f32 %v2139_v40, %v1467_v32 }
 0x724   : > { %v1482_v44 = vmul.f32 %v1841_v41, %v1475_v42 }
 0x726   : > { %v1489_v45 = vadd.f32 %v1842_v43, %v1482_v44 }
 0x728   : > { %v1490_v46 = vpack.c.bf16 %v1489_v45, %v1489_v45 }
 0x72a   : > { %2001 = vmatmul.mubr.msk.bf16.vlgmr.msra.gmra.mrb[32].mxu1 %vm641_vm1, %v1490_v46 }
 0x7fd   : > { %v1551_v52 = vpop.f32.mrb[32].mxu1 }
 0x7fe   : > { %v1552_v53 = vadd.f32 %v1843_v51, %v1551_v52  ;;  %v2002_v54 = vpop.f32.mrb[33].mxu1 }
 0x7ff   : > { %v1554_v55 = vpop.f32.mrb[34].mxu1 }
 0x800   : > { %v1559_v56 = vmul.f32 0.70710677, %v1552_v53  ;;  %v2003_v57 = vpop.f32.mrb[35].mxu1  ;;  %v1557_v59 = vmul.f32 0.5, %v1552_v53 }
 0x802   : > { %2140 = verf.f32 %v1559_v56 }
 0x80c   : > { %v2141_v58 = vpop.eup %2140 }
 0x80d   : > { %v1561_v60 = vadd.f32 1.0, %v2141_v58 }
 0x80f   : > { %v1562_v0 = vmul.f32 %v1561_v60, %v1557_v59 }
 0x811   : > { %v1563_v61 = vpack.c.bf16 %v1562_v0, %v1562_v0 }
 0x813   : > { %2013 = vmatmul.mubr.msk.bf16.vlgmr.msra.gmra.mrb[28].mxu0 %vm1603_vm4, %v1563_v61 }
 0x8e6   : > { %v1641_v63 = vpop.f32.mrb[28].mxu0 }
 0x8e7   : > { %v1642_v1 = vadd.f32 %v1847_v62, %v1641_v63  ;;  %v2014_v2 = vpop.f32.mrb[29].mxu0 }
 0x8e8   : > { %v1644_v3 = vpop.f32.mrb[30].mxu0 }
 0x8e9   : > { %v2015_v4 = vpop.f32.mrb[31].mxu0  ;;  %v1647_v5 = vadd.f32 %v1642_v1, %v1489_v45 }
 0x8eb   : > { %v1650_v6 = vsel %vm641_vm1, %v1647_v5, 0.0 }
 0x8ec   : > { %1651 = vadd.xlane.f32.xlu0 %v1650_v6 }
 0x979   : > { %v1652_v7 = vpop.xlane.xlu0 %1651 }
 0x97a   : > { %v1653_v8 = vmul.f32 0.03125, %v1652_v7 }
 0x97c   : > { %v1654_v9 = vsub.f32 %v1647_v5, %v1653_v8 }
 0x97e   : > { %v1655_v10 = vmul.f32 %v1654_v9, %v1654_v9 }
 0x980   : > { %v1656_v11 = vsel %vm641_vm1, %v1655_v10, 0.0 }
 0x981   : > { %1657 = vadd.xlane.f32.xlu1 %v1656_v11 }
 0xa0e   : > { %v1658_v12 = vpop.xlane.xlu1 %1657 }
 0xa0f   : > { %v1659_v13 = vmul.f32 0.03125, %v1658_v12 }
 0xa11   : > { %v1660_v14 = vadd.f32 1e-12, %v1659_v13 }
 0xa13   : > { %2142 = vrsqrt.f32 %v1660_v14 }
 0xa1d   : > { %v2143_v15 = vpop.eup %2142 }
 0xa1e   : > { %v1662_v17 = vmul.f32 %v2143_v15, %v1654_v9 }
 0xa20   : > { %v1669_v19 = vmul.f32 %v1853_v16, %v1662_v17 }
 0xa22   : > { %v1676_v20 = vadd.f32 %v1854_v18, %v1669_v19 }
 0xa24   : > { %1677 = vst.msk [vmem:[%s615_s12] sm:$0xff] %vm641_vm1, %v1676_v20 }
 0xa25   : > { %2299 = shalt.err (!%p2296_p0)
}
 0xa26   : > { %s2300_s9 = scalar_lea.hbm %s2872_s3, 128  ;;  %s2304_s20 = scalar_lea.hbm %s2980_s2, 256 }
 0xa27   : > { %p2301_p2 = scmp.ne.s32.totalorder %s2872_s3, %s2300_s9  ;;  %p2305_p11 = scmp.lt.u32.totalorder %s2872_s3, %s2980_s2 }
 0xa28   : > { %p2306_p12 = scmp.lt.u32.totalorder %s2304_s20, %s2300_s9  ;;  %p2308_p6 = scmp.lt.u32.totalorder %s2300_s9, %s2872_s3 }
 0xa29   : > { %p2302_p8 = pnand %p2301_p2, %p2981_p5 }
 0xa2a   : > { %p2307_p1 = por %p2306_p12, %p2305_p11 }
 0xa2b   : > { %p2303_p10 = pneg %p2302_p8 }
 0xa2c   : > { %p2309_p7 = por %p2308_p6, %p2307_p1 }
 0xa2e   : > { %p2310_p9 = pnand %p2309_p7, %p2303_p10 }
 0xa30   : > { %2313 = shalt.err (!%p2310_p9)
}
 0xa31   : > { %2034 = dma.vmem_to_hbm [thread:$0]  (%p2981_p5), %s2874_s7, 128, %s2872_s3, %s1679_s18  }
 0xa32 PF: > { %s1704_s30 = sand.u32 1, %s2348_s24   ;;  %p2982_p4 = scmp.ne.s32.totalorder %s2965_s17, 0 }
 0xa33   : > { %p2983_p3 = scmp.ge.s32.totalorder %s2360_s27, 2  ;;  %s1705_s15 = scalar_lea.sflag [#allocation4], %s1704_s30 }
 0xa35   : > { %p2054_p13 = pnand %p2983_p3, %p2982_p4 }
 0xa37   : > { %2343 = dma.done.wait (!%p2054_p13), %s1705_s15, 128  }
 0xa38   : > { %2345 = vsyncadd (!%p2054_p13), %s1705_s15, 4294967168  ;;  %p32_p0 = scmp.ge.s32.totalorder %s2607_s8, 4   ;;  %s2984_s24 = smov %s2352_s25 }
 0xa39   : > { %s2985_s25 = smov %s2356_s26  ;;  %s2986_s26 = smov %s2618_s22 }
 0xa3a   : > { %s2987_s27 = smov %s2607_s8  ;;  %34 = sbr.rel (!%p32_p0) target bundleno = 21 (0x15), region = 149 }
 0xa41   :  { %1710 = vsyncpa [#allocation3], 1 }
 0xa42   :  { %1712 = vsyncpa [#allocation3 + $0x1], 1 }
 0xa43   :  { %1713 = vsyncpa [#allocation6], 1 }
 0xa44   :  { %1714 = vsyncpa [#allocation9], 1 }
 0xa45   :  { %1715 = vsyncpa [#allocation4], 1 }
 0xa46   :  { %1717 = vsyncpa [#allocation4 + $0x1], 1 }

</bundles_post_ra>
